<compile_context>
chip_gen: v7x
topology: tpu7x:2x2x1
jax: 0.10.0
libtpu: 0.0.40
codegen_flags: <defaults>
</compile_context>

<pallas_src>
import functools
import math

import jax
import jax.numpy as jnp
from jax.experimental import pallas as pl
from jax.experimental.pallas import tpu as pltpu


# ----------------------------- Pallas kernel --------------------------------

def _encoder_layer_kernel(
    x_ref,                     # (S, H) f32 activations for ONE batch element
    wqkv_ref, bqkv_ref,        # (H, 3H) bf16, (1, 3H) f32   fused Q|K|V (q pre-scaled)
    wao_ref, bao_ref,          # (H, H)  bf16, (1, H)  f32   attention output dense
    g1_ref, be1_ref,           # (1, H)  f32                 LayerNorm after attention
    wi_ref, bi_ref,            # (H, I)  bf16, (1, I)  f32   intermediate dense
    wo_ref, bo_ref,            # (I, H)  bf16, (1, H)  f32   output dense
    g2_ref, be2_ref,           # (1, H)  f32                 final LayerNorm
    o_ref,                     # (S, H) f32
    *, num_heads, head_dim, eps, bf16_transcendentals,
):
    NH, Dh = num_heads, head_dim
    H = NH * Dh
    S = x_ref.shape[0]

    x = x_ref[...]             # f32; kept f32 for residuals / LayerNorm (VPU/EUP work)

    def matmul(a, w_ref):
        # bf16 operands on the MXU, f32 accumulation.
        return jnp.dot(a.astype(w_ref.dtype), w_ref[...],
                       preferred_element_type=jnp.float32)

    def layernorm(v, g_ref, b_ref):
        mu = jnp.mean(v, axis=-1, keepdims=True)
        d = v - mu
        var = jnp.mean(d * d, axis=-1, keepdims=True)
        return d * jax.lax.rsqrt(var + eps) * g_ref[...] + b_ref[...]

    # ---- fused QKV projection: a single (S, H) @ (H, 3H) MXU matmul ----
    # wq / bq were pre-scaled by 1/sqrt(Dh) in the wrapper, so no score scaling
    # is needed later (saves a full VPU pass over the (NH, S, S) tensor).
    qkv = matmul(x, wqkv_ref) + bqkv_ref[...]          # (S, 3H) f32

    # ---- move heads to a leading batch axis (one relayout per tensor) ----
    # TODO(synk): at production Dh=64 the lane dim is half a vreg; consider
    # packing two heads per 128-lane group to improve MXU fill / vreg use.
    def split_heads(t2d):                              # (S, H) -> (NH, S, Dh)
        return pltpu.einshape("snd->nsd", t2d.reshape(S, NH, Dh))

    qh = split_heads(qkv[:, 0 * H:1 * H]).astype(jnp.bfloat16)
    kh = split_heads(qkv[:, 1 * H:2 * H]).astype(jnp.bfloat16)
    vh = split_heads(qkv[:, 2 * H:3 * H]).astype(jnp.bfloat16)

    # ---- per-batch attention over ALL heads with two batched einsums ----
    s = jnp.einsum("nqd,nkd->nqk", qh, kh,
                   preferred_element_type=jnp.float32)             # (NH, S, S) f32
    s = s - jnp.max(s, axis=-1, keepdims=True)
    # exp in bf16 on v6e/v7x (bf16 EUP ~2x throughput); f32 on v5e (no bf16 EUP).
    p = jnp.exp(s.astype(jnp.bfloat16)) if bf16_transcendentals else jnp.exp(s)
    denom = jnp.sum(p, axis=-1, keepdims=True).astype(jnp.float32)  # (NH, S, 1)

    # Normalize AFTER the PV matmul: O(NH*S*Dh) multiplies instead of O(NH*S^2).
    ctx_h = jnp.einsum("nqk,nkd->nqd", p.astype(jnp.bfloat16), vh,
                       preferred_element_type=jnp.float32)          # (NH, S, Dh)
    ctx_h = ctx_h * pl.reciprocal(denom, approx=True)               # EUP slot
    ctx = pltpu.einshape("nsd->snd", ctx_h).reshape(S, H)           # (S, H) f32

    # ---- SelfOutput: dense + (dropout no-op) + residual + LayerNorm ----
    attn_out = layernorm(matmul(ctx, wao_ref) + bao_ref[...] + x, g1_ref, be1_ref)

    # ---- Intermediate: dense + exact (erf) GELU ----
    # TODO(synk): gate the erf to bf16 on v6e/v7x once Mosaic bf16-erf lowering
    # is validated; erf count (S*I) is small vs exp count (NH*S^2), so kept f32.
    inter = matmul(attn_out, wi_ref) + bi_ref[...]                  # (S, I)
    inter = 0.5 * inter * (1.0 + jax.lax.erf(inter * (1.0 / math.sqrt(2.0))))

    # ---- Output: dense + (dropout no-op) + residual + LayerNorm ----
    out = layernorm(matmul(inter, wo_ref) + bo_ref[...] + attn_out, g2_ref, be2_ref)

    # At production H (multiple of 128) this store is lane-dense / unmasked.
    o_ref[...] = out.astype(o_ref.dtype)


# ------------------------------ weight prep ----------------------------------

def prepare_encoder_params(params, *, num_heads):
    """One-time weight packing: fuse QKV, fold 1/sqrt(Dh) into q, cast to bf16.

    Hoisted out of the per-call path so a stacked encoder does not redo ~MiBs of
    concatenation / casting on every layer invocation.
    """
    H = params["wq"].shape[0]
    Dh = H // num_heads
    scale = 1.0 / math.sqrt(Dh)

    wqkv = jnp.concatenate(
        [params["wq"] * scale, params["wk"], params["wv"]], axis=1)   # (H, 3H)
    bqkv = jnp.concatenate(
        [params["bq"] * scale, params["bk"], params["bv"]], axis=1)   # (1, 3H)

    bf = lambda w: w.astype(jnp.bfloat16)
    f32 = lambda w: w.astype(jnp.float32)
    return (
        bf(wqkv), f32(bqkv),
        bf(params["wao"]), f32(params["bao"]),
        f32(params["g1"]), f32(params["be1"]),
        bf(params["wi"]), f32(params["bi"]),
        bf(params["wo"]), f32(params["bo"]),
        f32(params["g2"]), f32(params["be2"]),
    )


def _tpu_tuning():
    """Per-generation knobs: bf16 EUP availability and VMEM budget."""
    kind = ""
    try:
        kind = jax.devices()[0].device_kind.lower()
    except Exception:
        pass
    is_pre_v6 = any(t in kind for t in ("v2", "v3", "v4", "v5"))
    is_v7 = ("v7" in kind) or ("7x" in kind)
    bf16_transcendentals = not is_pre_v6          # v6e / v7x have a bf16 EUP path
    # v7x has only 64 MiB VMEM per TC -> leave headroom; v5e/v6e have 128 MiB.
    vmem_limit_bytes = (48 if is_v7 else 64) * 1024 * 1024
    return bf16_transcendentals, vmem_limit_bytes


# ------------------------------- wrapper -------------------------------------

def encoder_layer_pallas(x, prepared_weights, *, num_heads, eps=1e-12):
    B, S, H = x.shape
    assert H % num_heads == 0
    Dh = H // num_heads

    bf16_eup, vmem_limit = _tpu_tuning()

    kernel = functools.partial(
        _encoder_layer_kernel,
        num_heads=num_heads, head_dim=Dh, eps=eps,
        bf16_transcendentals=bf16_eup,
    )

    # Weights: full-array blocks with a constant index_map (no re-DMA across
    # grid steps).
    # TODO(synk): single-buffer these with pipeline_mode=pl.Buffered(1) on v7x
    # (bf16 weights ~11 MiB at H=768/I=3072; double-buffering wastes ~11 MiB).
    def weight_spec(a):
        return pl.BlockSpec(a.shape, lambda b: (0,) * a.ndim)

    # Grid over batch ("parallel"): per-batch attention, no cross-batch mask,
    # megacore splits batches across the 2 TCs on v7x.
    # TODO(synk): for very long sequences additionally tile S (flash-style KV
    # loop) so the (NH, S, S) score block stays within the VMEM budget.
    out = pl.pallas_call(
        kernel,
        out_shape=jax.ShapeDtypeStruct((B, S, H), x.dtype),
        grid_spec=pltpu.PrefetchScalarGridSpec(
            num_scalar_prefetch=0,
            grid=(B,),
            in_specs=[pl.BlockSpec((None, S, H), lambda b: (b, 0, 0))]
                     + [weight_spec(a) for a in prepared_weights],
            out_specs=pl.BlockSpec((None, S, H), lambda b: (b, 0, 0)),
        ),
        compiler_params=pltpu.CompilerParams(
            dimension_semantics=("parallel",),
            vmem_limit_bytes=vmem_limit,
        ),
    )(x, *prepared_weights)

    return out


# ---------------------------- pure-JAX reference ------------------------------

def encoder_layer_ref(x, p, *, num_heads, eps=1e-12):
    B, S, H = x.shape
    dh = H // num_heads

    def ln(v, g, b):
        mu = jnp.mean(v, axis=-1, keepdims=True)
        var = jnp.mean((v - mu) ** 2, axis=-1, keepdims=True)
        return (v - mu) / jnp.sqrt(var + eps) * g + b

    q = x @ p["wq"] + p["bq"]
    k = x @ p["wk"] + p["bk"]
    v = x @ p["wv"] + p["bv"]
    q = q.reshape(B, S, num_heads, dh).transpose(0, 2, 1, 3)
    k = k.reshape(B, S, num_heads, dh).transpose(0, 2, 1, 3)
    v = v.reshape(B, S, num_heads, dh).transpose(0, 2, 1, 3)
    s = jnp.einsum("bhqd,bhkd->bhqk", q, k) / math.sqrt(dh)
    pmat = jax.nn.softmax(s, axis=-1)
    ctx = jnp.einsum("bhqk,bhkd->bhqd", pmat, v).transpose(0, 2, 1, 3).reshape(B, S, H)
    attn = ln(ctx @ p["wao"] + p["bao"] + x, p["g1"], p["be1"])
    inter = attn @ p["wi"] + p["bi"]
    inter = 0.5 * inter * (1.0 + jax.lax.erf(inter / math.sqrt(2.0)))
    return ln(inter @ p["wo"] + p["bo"] + attn, p["g2"], p["be2"])


# --------------------------------- main ---------------------------------------

if __name__ == "__main__":
    # small config consistent with the module: hidden=32, heads=4, intermediate=64
    B, S, H, NH, I = 2, 8, 32, 4, 64
    EPS = 1e-12

    key = jax.random.PRNGKey(0)
    keys = jax.random.split(key, 16)

    def w(k, shape, scale=0.05):
        return (scale * jax.random.normal(k, shape)).astype(jnp.float32)

    # weights stored as [in, out] (PyTorch nn.Linear weight transposed),
    # biases / LN params stored as [1, H] for clean 2D VMEM blocks.
    params = {
        "wq":  w(keys[0], (H, H)),  "bq":  w(keys[1], (1, H)),
        "wk":  w(keys[2], (H, H)),  "bk":  w(keys[3], (1, H)),
        "wv":  w(keys[4], (H, H)),  "bv":  w(keys[5], (1, H)),
        "wao": w(keys[6], (H, H)),  "bao": w(keys[7], (1, H)),
        "g1":  jnp.ones((1, H), jnp.float32),
        "be1": jnp.zeros((1, H), jnp.float32),
        "wi":  w(keys[8], (H, I)),  "bi":  w(keys[9], (1, I)),
        "wo":  w(keys[10], (I, H)), "bo":  w(keys[11], (1, H)),
        "g2":  jnp.ones((1, H), jnp.float32),
        "be2": jnp.zeros((1, H), jnp.float32),
    }

    x = jax.random.normal(keys[12], (B, S, H), dtype=jnp.float32)

    prepared = prepare_encoder_params(params, num_heads=NH)   # one-time prep
    out = encoder_layer_pallas(x, prepared, num_heads=NH, eps=EPS)
    out = jax.block_until_ready(out)

    ref = encoder_layer_ref(x, params, num_heads=NH, eps=EPS)
    assert out.shape == (B, S, H)
    # Documented inference-accuracy decision: bf16 MXU operands, bf16 exp on
    # v6e/v7x, and the approx softmax reciprocal vs the full-f32 reference.
    assert jnp.allclose(out, ref, rtol=2e-2, atol=2e-2), "mismatch vs reference"

    print("KERNEL_OK")
</pallas_src>

<mosaic_0001>
module attributes {stable_mosaic.version = 11 : i64} {
  func.func @_encoder_layer_kernel(%arg0: i32, %arg1: memref<1x8x32xf32, #tpu.memory_space<vmem>>, %arg2: memref<32x96xbf16, #tpu.memory_space<vmem>>, %arg3: memref<1x96xf32, #tpu.memory_space<vmem>>, %arg4: memref<32x32xbf16, #tpu.memory_space<vmem>>, %arg5: memref<1x32xf32, #tpu.memory_space<vmem>>, %arg6: memref<1x32xf32, #tpu.memory_space<vmem>>, %arg7: memref<1x32xf32, #tpu.memory_space<vmem>>, %arg8: memref<32x64xbf16, #tpu.memory_space<vmem>>, %arg9: memref<1x64xf32, #tpu.memory_space<vmem>>, %arg10: memref<64x32xbf16, #tpu.memory_space<vmem>>, %arg11: memref<1x32xf32, #tpu.memory_space<vmem>>, %arg12: memref<1x32xf32, #tpu.memory_space<vmem>>, %arg13: memref<1x32xf32, #tpu.memory_space<vmem>>, %arg14: memref<1x8x32xf32, #tpu.memory_space<vmem>>) attributes {dimension_semantics = [#tpu.dimension_semantics<parallel>], iteration_bounds = array<i64: 2>, scalar_prefetch = 0 : i64, scratch_operands = 0 : i64, tpu.core_type = #tpu.core_type<tc>, window_params = [{transform_indices = @transform_0, window_bounds = array<i64: 1, 8, 32>}, {pipeline_mode = #tpu.pipeline_mode<synchronous>, transform_indices = @transform_1, window_bounds = array<i64: 32, 96>}, {pipeline_mode = #tpu.pipeline_mode<synchronous>, transform_indices = @transform_2, window_bounds = array<i64: 1, 96>}, {pipeline_mode = #tpu.pipeline_mode<synchronous>, transform_indices = @transform_3, window_bounds = array<i64: 32, 32>}, {pipeline_mode = #tpu.pipeline_mode<synchronous>, transform_indices = @transform_4, window_bounds = array<i64: 1, 32>}, {pipeline_mode = #tpu.pipeline_mode<synchronous>, transform_indices = @transform_5, window_bounds = array<i64: 1, 32>}, {pipeline_mode = #tpu.pipeline_mode<synchronous>, transform_indices = @transform_6, window_bounds = array<i64: 1, 32>}, {pipeline_mode = #tpu.pipeline_mode<synchronous>, transform_indices = @transform_7, window_bounds = array<i64: 32, 64>}, {pipeline_mode = #tpu.pipeline_mode<synchronous>, transform_indices = @transform_8, window_bounds = array<i64: 1, 64>}, {pipeline_mode = #tpu.pipeline_mode<synchronous>, transform_indices = @transform_9, window_bounds = array<i64: 64, 32>}, {pipeline_mode = #tpu.pipeline_mode<synchronous>, transform_indices = @transform_10, window_bounds = array<i64: 1, 32>}, {pipeline_mode = #tpu.pipeline_mode<synchronous>, transform_indices = @transform_11, window_bounds = array<i64: 1, 32>}, {pipeline_mode = #tpu.pipeline_mode<synchronous>, transform_indices = @transform_12, window_bounds = array<i64: 1, 32>}, {transform_indices = @transform_13, window_bounds = array<i64: 1, 8, 32>}]} {
    %c0 = arith.constant 0 : index
    %c0_0 = arith.constant 0 : index
    %c0_1 = arith.constant 0 : index
    %0 = vector.load %arg1[%c0, %c0_0, %c0_1] : memref<1x8x32xf32, #tpu.memory_space<vmem>>, vector<1x8x32xf32>
    %1 = vector.shape_cast %0 : vector<1x8x32xf32> to vector<8x32xf32>
    %2 = arith.truncf %1 : vector<8x32xf32> to vector<8x32xbf16>
    %c0_2 = arith.constant 0 : index
    %c0_3 = arith.constant 0 : index
    %3 = vector.load %arg2[%c0_2, %c0_3] : memref<32x96xbf16, #tpu.memory_space<vmem>>, vector<32x96xbf16>
    %cst = arith.constant dense<0.000000e+00> : vector<8x96xf32>
    %4 = tpu.matmul %2, %3, %cst {dimension_numbers = #tpu.dot_dimension_numbers<[1], [0], [0], [1], [0, 0, 1, 1], [], []>} : vector<8x32xbf16>, vector<32x96xbf16>, vector<8x96xf32> -> vector<8x96xf32>
    %c0_4 = arith.constant 0 : index
    %c0_5 = arith.constant 0 : index
    %5 = vector.load %arg3[%c0_4, %c0_5] : memref<1x96xf32, #tpu.memory_space<vmem>>, vector<1x96xf32>
    %6 = vector.broadcast %5 : vector<1x96xf32> to vector<8x96xf32>
    %7 = arith.addf %4, %6 : vector<8x96xf32>
    %8 = vector.extract_strided_slice %7 {offsets = [0, 0], sizes = [8, 32], strides = [1, 1]} : vector<8x96xf32> to vector<8x32xf32>
    %9 = vector.shape_cast %8 : vector<8x32xf32> to vector<8x4x8xf32>
    %10 = tpu.transpose %9, [1, 0, 2] : vector<8x4x8xf32> -> vector<4x8x8xf32>
    %11 = arith.truncf %10 : vector<4x8x8xf32> to vector<4x8x8xbf16>
    %12 = vector.extract_strided_slice %7 {offsets = [0, 32], sizes = [8, 32], strides = [1, 1]} : vector<8x96xf32> to vector<8x32xf32>
    %13 = vector.shape_cast %12 : vector<8x32xf32> to vector<8x4x8xf32>
    %14 = tpu.transpose %13, [1, 0, 2] : vector<8x4x8xf32> -> vector<4x8x8xf32>
    %15 = arith.truncf %14 : vector<4x8x8xf32> to vector<4x8x8xbf16>
    %16 = vector.extract_strided_slice %7 {offsets = [0, 64], sizes = [8, 32], strides = [1, 1]} : vector<8x96xf32> to vector<8x32xf32>
    %17 = vector.shape_cast %16 : vector<8x32xf32> to vector<8x4x8xf32>
    %18 = tpu.transpose %17, [1, 0, 2] : vector<8x4x8xf32> -> vector<4x8x8xf32>
    %19 = arith.truncf %18 : vector<4x8x8xf32> to vector<4x8x8xbf16>
    "tpu.trace_start"() <{level = 10 : i32, message = "nqd,nkd->nqk"}> : () -> ()
    %cst_6 = arith.constant dense<0.000000e+00> : vector<4x8x8xf32>
    %20 = tpu.matmul %11, %15, %cst_6 {dimension_numbers = #tpu.dot_dimension_numbers<[2], [2], [1], [1], [0, 0, 0, 1, 1, 1], [0], [0]>} : vector<4x8x8xbf16>, vector<4x8x8xbf16>, vector<4x8x8xf32> -> vector<4x8x8xf32>
    "tpu.trace_stop"() : () -> ()
    %cst_7 = arith.constant dense<0xFF800000> : vector<4x8xf32>
    %21 = vector.multi_reduction <maximumf>, %20, %cst_7 [2] : vector<4x8x8xf32> to vector<4x8xf32>
    %22 = vector.shape_cast %21 : vector<4x8xf32> to vector<4x8x1xf32>
    %23 = vector.broadcast %22 : vector<4x8x1xf32> to vector<4x8x8xf32>
    %24 = arith.subf %20, %23 : vector<4x8x8xf32>
    %25 = arith.truncf %24 : vector<4x8x8xf32> to vector<4x8x8xbf16>
    %26 = math.exp %25 : vector<4x8x8xbf16>
    %27 = arith.extf %26 : vector<4x8x8xbf16> to vector<4x8x8xf32>
    %cst_8 = arith.constant dense<0.000000e+00> : vector<4x8xf32>
    %28 = vector.multi_reduction <add>, %27, %cst_8 [2] : vector<4x8x8xf32> to vector<4x8xf32>
    %29 = vector.shape_cast %28 : vector<4x8xf32> to vector<4x8x1xf32>
    %30 = arith.truncf %29 : vector<4x8x1xf32> to vector<4x8x1xbf16>
    %31 = arith.extf %30 : vector<4x8x1xbf16> to vector<4x8x1xf32>
    "tpu.trace_start"() <{level = 10 : i32, message = "nqk,nkd->nqd"}> : () -> ()
    %cst_9 = arith.constant dense<0.000000e+00> : vector<4x8x8xf32>
    %32 = tpu.matmul %26, %19, %cst_9 {dimension_numbers = #tpu.dot_dimension_numbers<[2], [1], [1], [2], [0, 0, 0, 1, 1, 2], [0], [0]>} : vector<4x8x8xbf16>, vector<4x8x8xbf16>, vector<4x8x8xf32> -> vector<4x8x8xf32>
    "tpu.trace_stop"() : () -> ()
    %33 = tpu.reciprocal %31 {approx = true} : vector<4x8x1xf32> -> vector<4x8x1xf32>
    %34 = vector.broadcast %33 : vector<4x8x1xf32> to vector<4x8x8xf32>
    %35 = arith.mulf %32, %34 : vector<4x8x8xf32>
    %36 = tpu.transpose %35, [1, 0, 2] : vector<4x8x8xf32> -> vector<8x4x8xf32>
    %37 = vector.shape_cast %36 : vector<8x4x8xf32> to vector<8x32xf32>
    %38 = arith.truncf %37 : vector<8x32xf32> to vector<8x32xbf16>
    %c0_10 = arith.constant 0 : index
    %c0_11 = arith.constant 0 : index
    %39 = vector.load %arg4[%c0_10, %c0_11] : memref<32x32xbf16, #tpu.memory_space<vmem>>, vector<32x32xbf16>
    %cst_12 = arith.constant dense<0.000000e+00> : vector<8x32xf32>
    %40 = tpu.matmul %38, %39, %cst_12 {dimension_numbers = #tpu.dot_dimension_numbers<[1], [0], [0], [1], [0, 0, 1, 1], [], []>} : vector<8x32xbf16>, vector<32x32xbf16>, vector<8x32xf32> -> vector<8x32xf32>
    %c0_13 = arith.constant 0 : index
    %c0_14 = arith.constant 0 : index
    %41 = vector.load %arg5[%c0_13, %c0_14] : memref<1x32xf32, #tpu.memory_space<vmem>>, vector<1x32xf32>
    %42 = vector.broadcast %41 : vector<1x32xf32> to vector<8x32xf32>
    %43 = arith.addf %40, %42 : vector<8x32xf32>
    %44 = arith.addf %43, %1 : vector<8x32xf32>
    %cst_15 = arith.constant dense<0.000000e+00> : vector<8xf32>
    %45 = vector.multi_reduction <add>, %44, %cst_15 [1] : vector<8x32xf32> to vector<8xf32>
    %46 = vector.shape_cast %45 : vector<8xf32> to vector<8x1xf32>
    %cst_16 = arith.constant 3.200000e+01 : f32
    %47 = vector.broadcast %cst_16 : f32 to vector<8x1xf32>
    %48 = arith.divf %46, %47 : vector<8x1xf32>
    %49 = vector.broadcast %48 : vector<8x1xf32> to vector<8x32xf32>
    %50 = arith.subf %44, %49 : vector<8x32xf32>
    %51 = arith.mulf %50, %50 : vector<8x32xf32>
    %cst_17 = arith.constant dense<0.000000e+00> : vector<8xf32>
    %52 = vector.multi_reduction <add>, %51, %cst_17 [1] : vector<8x32xf32> to vector<8xf32>
    %53 = vector.shape_cast %52 : vector<8xf32> to vector<8x1xf32>
    %cst_18 = arith.constant 3.200000e+01 : f32
    %54 = vector.broadcast %cst_18 : f32 to vector<8x1xf32>
    %55 = arith.divf %53, %54 : vector<8x1xf32>
    %cst_19 = arith.constant 9.99999996E-13 : f32
    %56 = vector.broadcast %cst_19 : f32 to vector<8x1xf32>
    %57 = arith.addf %55, %56 : vector<8x1xf32>
    %58 = math.rsqrt %57 : vector<8x1xf32>
    %59 = vector.broadcast %58 : vector<8x1xf32> to vector<8x32xf32>
    %60 = arith.mulf %50, %59 : vector<8x32xf32>
    %c0_20 = arith.constant 0 : index
    %c0_21 = arith.constant 0 : index
    %61 = vector.load %arg6[%c0_20, %c0_21] : memref<1x32xf32, #tpu.memory_space<vmem>>, vector<1x32xf32>
    %62 = vector.broadcast %61 : vector<1x32xf32> to vector<8x32xf32>
    %63 = arith.mulf %60, %62 : vector<8x32xf32>
    %c0_22 = arith.constant 0 : index
    %c0_23 = arith.constant 0 : index
    %64 = vector.load %arg7[%c0_22, %c0_23] : memref<1x32xf32, #tpu.memory_space<vmem>>, vector<1x32xf32>
    %65 = vector.broadcast %64 : vector<1x32xf32> to vector<8x32xf32>
    %66 = arith.addf %63, %65 : vector<8x32xf32>
    %67 = arith.truncf %66 : vector<8x32xf32> to vector<8x32xbf16>
    %c0_24 = arith.constant 0 : index
    %c0_25 = arith.constant 0 : index
    %68 = vector.load %arg8[%c0_24, %c0_25] : memref<32x64xbf16, #tpu.memory_space<vmem>>, vector<32x64xbf16>
    %cst_26 = arith.constant dense<0.000000e+00> : vector<8x64xf32>
    %69 = tpu.matmul %67, %68, %cst_26 {dimension_numbers = #tpu.dot_dimension_numbers<[1], [0], [0], [1], [0, 0, 1, 1], [], []>} : vector<8x32xbf16>, vector<32x64xbf16>, vector<8x64xf32> -> vector<8x64xf32>
    %c0_27 = arith.constant 0 : index
    %c0_28 = arith.constant 0 : index
    %70 = vector.load %arg9[%c0_27, %c0_28] : memref<1x64xf32, #tpu.memory_space<vmem>>, vector<1x64xf32>
    %71 = vector.broadcast %70 : vector<1x64xf32> to vector<8x64xf32>
    %72 = arith.addf %69, %71 : vector<8x64xf32>
    %cst_29 = arith.constant 5.000000e-01 : f32
    %73 = vector.broadcast %cst_29 : f32 to vector<8x64xf32>
    %74 = arith.mulf %73, %72 : vector<8x64xf32>
    %cst_30 = arith.constant 0.707106769 : f32
    %75 = vector.broadcast %cst_30 : f32 to vector<8x64xf32>
    %76 = arith.mulf %72, %75 : vector<8x64xf32>
    %77 = math.erf %76 : vector<8x64xf32>
    %cst_31 = arith.constant 1.000000e+00 : f32
    %78 = vector.broadcast %cst_31 : f32 to vector<8x64xf32>
    %79 = arith.addf %78, %77 : vector<8x64xf32>
    %80 = arith.mulf %74, %79 : vector<8x64xf32>
    %81 = arith.truncf %80 : vector<8x64xf32> to vector<8x64xbf16>
    %c0_32 = arith.constant 0 : index
    %c0_33 = arith.constant 0 : index
    %82 = vector.load %arg10[%c0_32, %c0_33] : memref<64x32xbf16, #tpu.memory_space<vmem>>, vector<64x32xbf16>
    %cst_34 = arith.constant dense<0.000000e+00> : vector<8x32xf32>
    %83 = tpu.matmul %81, %82, %cst_34 {dimension_numbers = #tpu.dot_dimension_numbers<[1], [0], [0], [1], [0, 0, 1, 1], [], []>} : vector<8x64xbf16>, vector<64x32xbf16>, vector<8x32xf32> -> vector<8x32xf32>
    %c0_35 = arith.constant 0 : index
    %c0_36 = arith.constant 0 : index
    %84 = vector.load %arg11[%c0_35, %c0_36] : memref<1x32xf32, #tpu.memory_space<vmem>>, vector<1x32xf32>
    %85 = vector.broadcast %84 : vector<1x32xf32> to vector<8x32xf32>
    %86 = arith.addf %83, %85 : vector<8x32xf32>
    %87 = arith.addf %86, %66 : vector<8x32xf32>
    %cst_37 = arith.constant dense<0.000000e+00> : vector<8xf32>
    %88 = vector.multi_reduction <add>, %87, %cst_37 [1] : vector<8x32xf32> to vector<8xf32>
    %89 = vector.shape_cast %88 : vector<8xf32> to vector<8x1xf32>
    %cst_38 = arith.constant 3.200000e+01 : f32
    %90 = vector.broadcast %cst_38 : f32 to vector<8x1xf32>
    %91 = arith.divf %89, %90 : vector<8x1xf32>
    %92 = vector.broadcast %91 : vector<8x1xf32> to vector<8x32xf32>
    %93 = arith.subf %87, %92 : vector<8x32xf32>
    %94 = arith.mulf %93, %93 : vector<8x32xf32>
    %cst_39 = arith.constant dense<0.000000e+00> : vector<8xf32>
    %95 = vector.multi_reduction <add>, %94, %cst_39 [1] : vector<8x32xf32> to vector<8xf32>
    %96 = vector.shape_cast %95 : vector<8xf32> to vector<8x1xf32>
    %cst_40 = arith.constant 3.200000e+01 : f32
    %97 = vector.broadcast %cst_40 : f32 to vector<8x1xf32>
    %98 = arith.divf %96, %97 : vector<8x1xf32>
    %cst_41 = arith.constant 9.99999996E-13 : f32
    %99 = vector.broadcast %cst_41 : f32 to vector<8x1xf32>
    %100 = arith.addf %98, %99 : vector<8x1xf32>
    %101 = math.rsqrt %100 : vector<8x1xf32>
    %102 = vector.broadcast %101 : vector<8x1xf32> to vector<8x32xf32>
    %103 = arith.mulf %93, %102 : vector<8x32xf32>
    %c0_42 = arith.constant 0 : index
    %c0_43 = arith.constant 0 : index
    %104 = vector.load %arg12[%c0_42, %c0_43] : memref<1x32xf32, #tpu.memory_space<vmem>>, vector<1x32xf32>
    %105 = vector.broadcast %104 : vector<1x32xf32> to vector<8x32xf32>
    %106 = arith.mulf %103, %105 : vector<8x32xf32>
    %c0_44 = arith.constant 0 : index
    %c0_45 = arith.constant 0 : index
    %107 = vector.load %arg13[%c0_44, %c0_45] : memref<1x32xf32, #tpu.memory_space<vmem>>, vector<1x32xf32>
    %108 = vector.broadcast %107 : vector<1x32xf32> to vector<8x32xf32>
    %109 = arith.addf %106, %108 : vector<8x32xf32>
    %c0_46 = arith.constant 0 : index
    %c0_47 = arith.constant 0 : index
    %c0_48 = arith.constant 0 : index
    %110 = vector.load %arg14[%c0_46, %c0_47, %c0_48] : memref<1x8x32xf32, #tpu.memory_space<vmem>>, vector<1x8x32xf32>
    %111 = vector.shape_cast %110 : vector<1x8x32xf32> to vector<8x32xf32>
    %112 = vector.shape_cast %109 : vector<8x32xf32> to vector<1x8x32xf32>
    tpu.vector_store %arg14[%c0_46, %c0_47, %c0_48], %112 {strides = array<i32>} : memref<1x8x32xf32, #tpu.memory_space<vmem>>, vector<1x8x32xf32>,
    return
  }
  func.func @transform_0(%arg0: i32) -> (i32, i32, i32) {
    %c0_i32 = arith.constant 0 : i32
    %c0_i32_0 = arith.constant 0 : i32
    %c0_i32_1 = arith.constant 0 : i32
    return %arg0, %c0_i32, %c0_i32_0 : i32, i32, i32
  }
  func.func @transform_1(%arg0: i32) -> (i32, i32) {
    %c0_i32 = arith.constant 0 : i32
    %c0_i32_0 = arith.constant 0 : i32
    %c0_i32_1 = arith.constant 0 : i32
    return %c0_i32, %c0_i32_0 : i32, i32
  }
  func.func @transform_2(%arg0: i32) -> (i32, i32) {
    %c0_i32 = arith.constant 0 : i32
    %c0_i32_0 = arith.constant 0 : i32
    %c0_i32_1 = arith.constant 0 : i32
    return %c0_i32, %c0_i32_0 : i32, i32
  }
  func.func @transform_3(%arg0: i32) -> (i32, i32) {
    %c0_i32 = arith.constant 0 : i32
    %c0_i32_0 = arith.constant 0 : i32
    %c0_i32_1 = arith.constant 0 : i32
    return %c0_i32, %c0_i32_0 : i32, i32
  }
  func.func @transform_4(%arg0: i32) -> (i32, i32) {
    %c0_i32 = arith.constant 0 : i32
    %c0_i32_0 = arith.constant 0 : i32
    %c0_i32_1 = arith.constant 0 : i32
    return %c0_i32, %c0_i32_0 : i32, i32
  }
  func.func @transform_5(%arg0: i32) -> (i32, i32) {
    %c0_i32 = arith.constant 0 : i32
    %c0_i32_0 = arith.constant 0 : i32
    %c0_i32_1 = arith.constant 0 : i32
    return %c0_i32, %c0_i32_0 : i32, i32
  }
  func.func @transform_6(%arg0: i32) -> (i32, i32) {
    %c0_i32 = arith.constant 0 : i32
    %c0_i32_0 = arith.constant 0 : i32
    %c0_i32_1 = arith.constant 0 : i32
    return %c0_i32, %c0_i32_0 : i32, i32
  }
  func.func @transform_7(%arg0: i32) -> (i32, i32) {
    %c0_i32 = arith.constant 0 : i32
    %c0_i32_0 = arith.constant 0 : i32
    %c0_i32_1 = arith.constant 0 : i32
    return %c0_i32, %c0_i32_0 : i32, i32
  }
  func.func @transform_8(%arg0: i32) -> (i32, i32) {
    %c0_i32 = arith.constant 0 : i32
    %c0_i32_0 = arith.constant 0 : i32
    %c0_i32_1 = arith.constant 0 : i32
    return %c0_i32, %c0_i32_0 : i32, i32
  }
  func.func @transform_9(%arg0: i32) -> (i32, i32) {
    %c0_i32 = arith.constant 0 : i32
    %c0_i32_0 = arith.constant 0 : i32
    %c0_i32_1 = arith.constant 0 : i32
    return %c0_i32, %c0_i32_0 : i32, i32
  }
  func.func @transform_10(%arg0: i32) -> (i32, i32) {
    %c0_i32 = arith.constant 0 : i32
    %c0_i32_0 = arith.constant 0 : i32
    %c0_i32_1 = arith.constant 0 : i32
    return %c0_i32, %c0_i32_0 : i32, i32
  }
  func.func @transform_11(%arg0: i32) -> (i32, i32) {
    %c0_i32 = arith.constant 0 : i32
    %c0_i32_0 = arith.constant 0 : i32
    %c0_i32_1 = arith.constant 0 : i32
    return %c0_i32, %c0_i32_0 : i32, i32
  }
  func.func @transform_12(%arg0: i32) -> (i32, i32) {
    %c0_i32 = arith.constant 0 : i32
    %c0_i32_0 = arith.constant 0 : i32
    %c0_i32_1 = arith.constant 0 : i32
    return %c0_i32, %c0_i32_0 : i32, i32
  }
  func.func @transform_13(%arg0: i32) -> (i32, i32, i32) {
    %c0_i32 = arith.constant 0 : i32
    %c0_i32_0 = arith.constant 0 : i32
    %c0_i32_1 = arith.constant 0 : i32
    return %arg0, %c0_i32, %c0_i32_0 : i32, i32, i32
  }
}

</mosaic_0001>

<bundles_post_ra>
// kernel: tpu_custom_call.1
= control target key start
LH: loop header
LB: loop body
LE: loop exit
PB: predicated region body
PF: predicated region fallthrough
CT: control target
= control target key end

     0   :  { %s3794_s0 = inlined_call_operand.hbm [shape: f32[2,8,32], index: 0, kind: input, shape index: {}]   ;;  %s3795_s1 = inlined_call_operand.hbm [shape: bf16[32,96], index: 1, kind: input, shape index: {}]   ;;  %s3796_s2 = inlined_call_operand.hbm [shape: f32[1,96], index: 2, kind: input, shape index: {}]   ;;  %s3797_s3 = inlined_call_operand.hbm [shape: bf16[32,32], index: 3, kind: input, shape index: {}]   ;;  %s3798_s4 = inlined_call_operand.hbm [shape: f32[1,32], index: 4, kind: input, shape index: {}]   ;;  %s3799_s5 = inlined_call_operand.hbm [shape: f32[1,32], index: 5, kind: input, shape index: {}]   ;;  %s3800_s6 = inlined_call_operand.hbm [shape: f32[1,32], index: 6, kind: input, shape index: {}]   ;;  %s3801_s7 = inlined_call_operand.hbm [shape: bf16[32,64], index: 7, kind: input, shape index: {}]   ;;  %s3802_s8 = inlined_call_operand.hbm [shape: f32[1,64], index: 8, kind: input, shape index: {}]   ;;  %s3803_s9 = inlined_call_operand.hbm [shape: bf16[64,32], index: 9, kind: input, shape index: {}]   ;;  %s3804_s10 = inlined_call_operand.hbm [shape: f32[1,32], index: 10, kind: input, shape index: {}]   ;;  %s3805_s11 = inlined_call_operand.hbm [shape: f32[1,32], index: 11, kind: input, shape index: {}]   ;;  %s3806_s12 = inlined_call_operand.hbm [shape: f32[1,32], index: 12, kind: input, shape index: {}]   ;;  %s3807_s13 = inlined_call_operand.hbm [shape: f32[2,8,32], index: 13, kind: output, shape index: {}]  }
   0x1   :  { %3819 = sst [smem:[#allocation35_spill]] %s3794_s0 }
   0x2   :  { %3820 = sst [smem:[#allocation36_spill]] %s3795_s1 }
   0x3   :  { %3821 = sst [smem:[#allocation37_spill]] %s3796_s2 }
   0x4   :  { %3822 = sst [smem:[#allocation38_spill]] %s3807_s13 }
   0x5   :  { %18 = vsyncpa [#allocation3], 0 }
   0x6   :  { %20 = vsyncpa [#allocation3 + $0x1], 0 }
   0x7   :  { %21 = vsyncpa [#allocation6], 0 }
   0x8   :  { %22 = vsyncpa [#allocation9], 0 }
   0x9   :  { %23 = vsyncpa [#allocation12], 0 }
   0xa   :  { %24 = vsyncpa [#allocation15], 0 }
   0xb   :  { %25 = vsyncpa [#allocation18], 0 }
   0xc   :  { %26 = vsyncpa [#allocation21], 0 }
   0xd   :  { %27 = vsyncpa [#allocation4], 0 }
   0xe   :  { %29 = vsyncpa [#allocation4 + $0x1], 0  ;;  %s3165_s25 = smov 0   ;;  %s3167_s26 = smov 0  }
   0xf   :  { %s3169_s27 = smov 0   ;;  %s3171_s28 = smov 0  }
  0x10 LB: > { %3823 = sst [smem:[#allocation32_spill]] %s3053_s25  ;;  %s3067_s29 = smov [#allocation5]   ;;  %s3065_s28 = sphi %s3171_s28, %s3864_s28   ;;  %s3061_s27 = sphi %s3169_s27, %s3863_s27   ;;  %s3057_s26 = sphi %s3167_s26, %s3862_s26   ;;  %s3053_s25 = sphi %s3165_s25, %s3861_s25  }
  0x11   : > { %s356_s30 = sshll.u32 %s3067_s29, 4  ;;  %s3186_s14 = sadd.s32 4294967295, %s3065_s28   ;;  %s3191_s30 = int_to_ptr.vmem [resolvable:$true] %s356_s30 }
  0x12   : > { %3824 = sst [smem:[#allocation33_spill]] %s3186_s14  ;;  %p2209_p0 = scmp.ge.s32.totalorder %s3065_s28, 1 }
  0x13   : > { %p3816_p1 = scmp.eq.s32.totalorder %s3186_s14, 0  ;;  %p344_p2 = scmp.lt.s32.totalorder %s3065_s28, 3 }
  0x14   : > { %s3068_s16 = smov [#allocation8]   ;;  %s3069_s19 = smov [#allocation11]  }
  0x15   : > { %p3193_p3 = pnand %p2209_p0, %p344_p2  ;;  %s380_s17 = sshll.u32 %s3068_s16, 4  ;;  %s3206_s17 = int_to_ptr.vmem [resolvable:$true] %s380_s17 }
  0x16   : > { %s405_s20 = sshll.u32 %s3069_s19, 4  ;;  %s3828_s1 = sld [smem:[#allocation36_spill]]  ;;  %s3208_s20 = int_to_ptr.vmem [resolvable:$true] %s405_s20 }
  0x17   : > { %s3825_s15 = scalar_select %p3193_p3, 1, 0 }
  0x18   : > { %p2448_p5 = pneg %p3193_p3 }
  0x19   : > { %3826 = sst [smem:[#allocation34_spill]] %s3825_s15 }
  0x1a   : > { %p3202_p6 = pnand %p2448_p5, %p3816_p1 }
  0x1c   : > { %s2609_s23 = scalar_lea.hbm %s3828_s1, 256  ;;  %p3218_p8 = pneg %p3202_p6 }
  0x1d   : > { %p2610_p7 = scmp.ne.s32.totalorder %s3828_s1, %s2609_s23  ;;  %p2616_p11 = scmp.lt.u32.totalorder %s2609_s23, %s3828_s1 }
  0x1f   : > { %p2612_p9 = pnand %p3218_p8, %p2610_p7 }
  0x21   : > { %p2613_p10 = pneg %p2612_p9 }
  0x23   : > { %p2618_p12 = pnand %p2616_p11, %p2613_p10 }
  0x25   : > { %2621 = shalt.err (!%p2618_p12)
}
  0x26   : > { %s2622_s21 = scalar_lea.vmem %s3191_s30, 256  ;;  %p2630_p5 = scmp.lt.s32.totalorder %s3191_s30, %s3191_s30 }
  0x27   : > { %p2623_p13 = scmp.ne.s32.totalorder %s3191_s30, %s2622_s21  ;;  %p2631_p4 = scmp.lt.s32.totalorder %s2622_s21, %s2622_s21 }
  0x29   : > { %p2625_p0 = pnand %p2623_p13, %p3218_p8  ;;  %p2632_p7 = por %p2631_p4, %p2630_p5 }
  0x2b   : > { %p2626_p2 = pneg %p2625_p0 }
  0x2d   : > { %p2633_p9 = pnand %p2632_p7, %p2626_p2 }
  0x2f   : > { %2636 = shalt.err (!%p2633_p9)
}
  0x30   : > { %s3814_s22 = smov 64   ;;  %s3071_s13 = smov 4  }
  0x31   : > { %2451 = dma.hbm_to_vmem [thread:$0]  (!%p3202_p6), %s3828_s1, 256, %s3191_s30, [#allocation6], %s3814_s22, %s3814_s22, %s3071_s13  }
  0x32   : > { %s2637_s21 = scalar_lea.hbm %s3797_s3, 256 }
  0x33   : > { %p2638_p4 = scmp.ne.s32.totalorder %s3797_s3, %s2637_s21  ;;  %p2644_p12 = scmp.lt.u32.totalorder %s2637_s21, %s3797_s3 }
  0x35   : > { %p2640_p10 = pnand %p2638_p4, %p3218_p8 }
  0x37   : > { %p2641_p11 = pneg %p2640_p10 }
  0x39   : > { %p2646_p13 = pnand %p2644_p12, %p2641_p11 }
  0x3b   : > { %2649 = shalt.err (!%p2646_p13)
}
  0x3c   : > { %s2650_s30 = scalar_lea.vmem %s3206_s17, 256  ;;  %p2658_p7 = scmp.lt.s32.totalorder %s3206_s17, %s3206_s17 }
  0x3d   : > { %p2651_p0 = scmp.ne.s32.totalorder %s3206_s17, %s2650_s30  ;;  %p2659_p9 = scmp.lt.s32.totalorder %s2650_s30, %s2650_s30 }
  0x3f   : > { %p2653_p2 = pnand %p2651_p0, %p3218_p8  ;;  %p2660_p4 = por %p2659_p9, %p2658_p7 }
  0x41   : > { %p2654_p5 = pneg %p2653_p2 }
  0x43   : > { %p2661_p10 = pnand %p2660_p4, %p2654_p5 }
  0x45   : > { %2664 = shalt.err (!%p2661_p10)
}
  0x46   : > { %2457 = dma.hbm_to_vmem [thread:$0]  (!%p3202_p6), %s3797_s3, 256, %s3206_s17, [#allocation9], %s3814_s22, %s3814_s22, %s3071_s13  }
  0x47   : > { %s2665_s23 = scalar_lea.hbm %s3799_s5, 16 }
  0x48   : > { %p2666_p11 = scmp.ne.s32.totalorder %s3799_s5, %s2665_s23  ;;  %p2672_p0 = scmp.lt.u32.totalorder %s2665_s23, %s3799_s5 }
  0x4a   : > { %p2668_p12 = pnand %p2666_p11, %p3218_p8 }
  0x4c   : > { %p2669_p13 = pneg %p2668_p12 }
  0x4e   : > { %p2674_p2 = pnand %p2672_p0, %p2669_p13 }
  0x50   : > { %2677 = shalt.err (!%p2674_p2)
}
  0x51   : > { %s2678_s17 = scalar_lea.vmem %s3208_s20, 16  ;;  %s2685_s30 = scalar_lea.vmem %s3208_s20, 32 }
  0x52   : > { %p2679_p5 = scmp.ne.s32.totalorder %s3208_s20, %s2678_s17  ;;  %p2686_p4 = scmp.lt.s32.totalorder %s3208_s20, %s3208_s20 }
  0x53   : > { %p2687_p10 = scmp.lt.s32.totalorder %s2685_s30, %s2678_s17 }
  0x54   : > { %p2681_p7 = pnand %p2679_p5, %p3218_p8 }
  0x55   : > { %p2688_p11 = por %p2687_p10, %p2686_p4 }
  0x56   : > { %p2682_p9 = pneg %p2681_p7 }
  0x58   : > { %p2689_p12 = pnand %p2688_p11, %p2682_p9 }
  0x5a   : > { %2692 = shalt.err (!%p2689_p12)
}
  0x5b   : > { %2463 = dma.hbm_to_vmem [thread:$0]  (!%p3202_p6), %s3799_s5, 16, %s3208_s20, [#allocation12]  }
  0x5c   : > { %s3072_s14 = smov [#allocation14]   ;;  %s3073_s23 = smov [#allocation17]  }
  0x5d   : > { %s426_s15 = sshll.u32 %s3072_s14, 4  ;;  %s450_s24 = sshll.u32 %s3073_s23, 4  ;;  %s427_s15 = int_to_ptr.vmem [resolvable:$true] %s426_s15  ;;  %s451_s24 = int_to_ptr.vmem [resolvable:$true] %s450_s24 }
  0x5e   : > { %s2693_s21 = scalar_lea.hbm %s3801_s7, 256 }
  0x5f   : > { %p2694_p13 = scmp.ne.s32.totalorder %s3801_s7, %s2693_s21  ;;  %p2700_p5 = scmp.lt.u32.totalorder %s2693_s21, %s3801_s7 }
  0x61   : > { %p2696_p0 = pnand %p2694_p13, %p3218_p8 }
  0x63   : > { %p2697_p2 = pneg %p2696_p0 }
  0x65   : > { %p2702_p7 = pnand %p2700_p5, %p2697_p2 }
  0x67   : > { %2705 = shalt.err (!%p2702_p7)
}
  0x68   : > { %s2706_s20 = scalar_lea.vmem %s427_s15, 256  ;;  %p2714_p11 = scmp.lt.s32.totalorder %s427_s15, %s427_s15 }
  0x69   : > { %p2707_p9 = scmp.ne.s32.totalorder %s427_s15, %s2706_s20  ;;  %p2715_p12 = scmp.lt.s32.totalorder %s2706_s20, %s2706_s20 }
  0x6b   : > { %p2709_p4 = pnand %p2707_p9, %p3218_p8  ;;  %p2716_p1 = por %p2715_p12, %p2714_p11 }
  0x6d   : > { %p2710_p10 = pneg %p2709_p4 }
  0x6f   : > { %p2717_p3 = pnand %p2716_p1, %p2710_p10 }
  0x71   : > { %2720 = shalt.err (!%p2717_p3)
}
  0x72   : > { %s3830_s25 = smov 64   ;;  %s2721_s19 = scalar_lea.hbm %s3803_s9, 512 }
  0x73   : > { %2469 = dma.hbm_to_vmem [thread:$0]  (!%p3202_p6), %s3801_s7, 256, %s427_s15, [#allocation15], %s3830_s25, %s3830_s25, %s3071_s13  }
  0x74   : > { %p2722_p1 = scmp.ne.s32.totalorder %s3803_s9, %s2721_s19  ;;  %p2728_p0 = scmp.lt.u32.totalorder %s2721_s19, %s3803_s9 }
  0x76   : > { %p2724_p3 = pnand %p2722_p1, %p3218_p8 }
  0x78   : > { %p2725_p13 = pneg %p2724_p3 }
  0x7a   : > { %p2730_p2 = pnand %p2728_p0, %p2725_p13 }
  0x7c   : > { %2733 = shalt.err (!%p2730_p2)
}
  0x7d   : > { %s2734_s20 = scalar_lea.vmem %s451_s24, 512  ;;  %p2742_p4 = scmp.lt.s32.totalorder %s451_s24, %s451_s24 }
  0x7e   : > { %p2735_p5 = scmp.ne.s32.totalorder %s451_s24, %s2734_s20  ;;  %p2743_p10 = scmp.lt.s32.totalorder %s2734_s20, %s2734_s20 }
  0x80   : > { %p2737_p7 = pnand %p2735_p5, %p3218_p8  ;;  %p2744_p11 = por %p2743_p10, %p2742_p4 }
  0x82   : > { %p2738_p9 = pneg %p2737_p7 }
  0x84   : > { %p2745_p12 = pnand %p2744_p11, %p2738_p9 }
  0x86   : > { %2748 = shalt.err (!%p2745_p12)
}
  0x87   : > { %2475 = dma.hbm_to_vmem [thread:$0]  (!%p3202_p6), %s3803_s9, 512, %s451_s24, [#allocation18], %s3830_s25, %s3830_s25, %s3071_s13  }
  0x88   : > { %s3074_s14 = smov [#allocation20]   ;;  %s3075_s29 = smov [#allocation7]  }
  0x89   : > { %s475_s23 = sshll.u32 %s3074_s14, 4  ;;  %s370_s19 = sshll.u32 %s3075_s29, 4  ;;  %s476_s23 = int_to_ptr.vmem [resolvable:$true] %s475_s23  ;;  %s371_s19 = int_to_ptr.vmem [resolvable:$true] %s370_s19 }
  0x8a   : > { %s2749_s30 = scalar_lea.hbm %s3805_s11, 16 }
  0x8b   : > { %p2750_p1 = scmp.ne.s32.totalorder %s3805_s11, %s2749_s30  ;;  %p2756_p0 = scmp.lt.u32.totalorder %s2749_s30, %s3805_s11 }
  0x8d   : > { %p2752_p3 = pnand %p2750_p1, %p3218_p8 }
  0x8f   : > { %p2753_p13 = pneg %p2752_p3 }
  0x91   : > { %p2758_p2 = pnand %p2756_p0, %p2753_p13 }
  0x93   : > { %2761 = shalt.err (!%p2758_p2)
}
  0x94   : > { %s2762_s13 = scalar_lea.vmem %s476_s23, 16  ;;  %s2769_s24 = scalar_lea.vmem %s476_s23, 32 }
  0x95   : > { %p2763_p5 = scmp.ne.s32.totalorder %s476_s23, %s2762_s13  ;;  %p2770_p4 = scmp.lt.s32.totalorder %s476_s23, %s476_s23 }
  0x96   : > { %p2771_p10 = scmp.lt.s32.totalorder %s2769_s24, %s2762_s13 }
  0x97   : > { %p2765_p7 = pnand %p2763_p5, %p3218_p8 }
  0x98   : > { %p2772_p11 = por %p2771_p10, %p2770_p4 }
  0x99   : > { %p2766_p9 = pneg %p2765_p7 }
  0x9b   : > { %p2773_p12 = pnand %p2772_p11, %p2766_p9 }
  0x9d   : > { %2776 = shalt.err (!%p2773_p12)
}
  0x9e   : > { %2481 = dma.hbm_to_vmem [thread:$0]  (!%p3202_p6), %s3805_s11, 16, %s476_s23, [#allocation21]  }
  0x9f   : > { %s3831_s2 = sld [smem:[#allocation37_spill]] }
  0xa5   : > { %s2777_s29 = scalar_lea.hbm %s3831_s2, 16 }
  0xa6   : > { %p2778_p1 = scmp.ne.s32.totalorder %s3831_s2, %s2777_s29  ;;  %p2784_p0 = scmp.lt.u32.totalorder %s2777_s29, %s3831_s2 }
  0xa8   : > { %p2780_p3 = pnand %p2778_p1, %p3218_p8 }
  0xaa   : > { %p2781_p13 = pneg %p2780_p3 }
  0xac   : > { %p2786_p2 = pnand %p2784_p0, %p2781_p13 }
  0xae   : > { %2789 = shalt.err (!%p2786_p2)
}
  0xaf   : > { %s2790_s20 = scalar_lea.vmem %s371_s19, 16  ;;  %s2797_s23 = scalar_lea.vmem %s371_s19, 32 }
  0xb0   : > { %p2791_p5 = scmp.ne.s32.totalorder %s371_s19, %s2790_s20  ;;  %p2798_p4 = scmp.lt.s32.totalorder %s371_s19, %s371_s19 }
  0xb1   : > { %p2799_p10 = scmp.lt.s32.totalorder %s2797_s23, %s2790_s20 }
  0xb2   : > { %p2793_p7 = pnand %p2791_p5, %p3218_p8 }
  0xb3   : > { %p2800_p11 = por %p2799_p10, %p2798_p4 }
  0xb4   : > { %p2794_p9 = pneg %p2793_p7 }
  0xb6   : > { %p2801_p12 = pnand %p2800_p11, %p2794_p9 }
  0xb8   : > { %2804 = shalt.err (!%p2801_p12)
}
  0xb9   : > { %2454 = dma.hbm_to_vmem [thread:$0]  (!%p3202_p6), %s3831_s2, 16, %s371_s19, [#allocation6]  }
  0xba   : > { %s3076_s24 = smov [#allocation10]   ;;  %s3077_s22 = smov [#allocation13]  }
  0xbb   : > { %s394_s25 = sshll.u32 %s3076_s24, 4  ;;  %s416_s1 = sshll.u32 %s3077_s22, 4  ;;  %s395_s25 = int_to_ptr.vmem [resolvable:$true] %s394_s25  ;;  %s417_s1 = int_to_ptr.vmem [resolvable:$true] %s416_s1 }
  0xbc   : > { %s2805_s21 = scalar_lea.hbm %s3798_s4, 16 }
  0xbd   : > { %p2806_p1 = scmp.ne.s32.totalorder %s3798_s4, %s2805_s21  ;;  %p2812_p0 = scmp.lt.u32.totalorder %s2805_s21, %s3798_s4 }
  0xbf   : > { %p2808_p3 = pnand %p2806_p1, %p3218_p8 }
  0xc1   : > { %p2809_p13 = pneg %p2808_p3 }
  0xc3   : > { %p2814_p2 = pnand %p2812_p0, %p2809_p13 }
  0xc5   : > { %2817 = shalt.err (!%p2814_p2)
}
  0xc6   : > { %s2818_s19 = scalar_lea.vmem %s395_s25, 16  ;;  %s2825_s23 = scalar_lea.vmem %s395_s25, 32 }
  0xc7   : > { %p2819_p5 = scmp.ne.s32.totalorder %s395_s25, %s2818_s19  ;;  %p2826_p4 = scmp.lt.s32.totalorder %s395_s25, %s395_s25 }
  0xc8   : > { %p2827_p10 = scmp.lt.s32.totalorder %s2825_s23, %s2818_s19 }
  0xc9   : > { %p2821_p7 = pnand %p2819_p5, %p3218_p8 }
  0xca   : > { %p2828_p11 = por %p2827_p10, %p2826_p4 }
  0xcb   : > { %p2822_p9 = pneg %p2821_p7 }
  0xcd   : > { %p2829_p12 = pnand %p2828_p11, %p2822_p9 }
  0xcf   : > { %2832 = shalt.err (!%p2829_p12)
}
  0xd0   : > { %2460 = dma.hbm_to_vmem [thread:$0]  (!%p3202_p6), %s3798_s4, 16, %s395_s25, [#allocation9]  }
  0xd1   : > { %s2833_s14 = scalar_lea.hbm %s3800_s6, 16 }
  0xd2   : > { %p2834_p1 = scmp.ne.s32.totalorder %s3800_s6, %s2833_s14  ;;  %p2840_p0 = scmp.lt.u32.totalorder %s2833_s14, %s3800_s6 }
  0xd4   : > { %p2836_p3 = pnand %p2834_p1, %p3218_p8 }
  0xd6   : > { %p2837_p13 = pneg %p2836_p3 }
  0xd8   : > { %p2842_p2 = pnand %p2840_p0, %p2837_p13 }
  0xda   : > { %2845 = shalt.err (!%p2842_p2)
}
  0xdb   : > { %s2846_s0 = scalar_lea.vmem %s417_s1, 16  ;;  %s2853_s25 = scalar_lea.vmem %s417_s1, 32 }
  0xdc   : > { %p2847_p5 = scmp.ne.s32.totalorder %s417_s1, %s2846_s0  ;;  %p2854_p4 = scmp.lt.s32.totalorder %s417_s1, %s417_s1 }
  0xdd   : > { %p2855_p10 = scmp.lt.s32.totalorder %s2853_s25, %s2846_s0 }
  0xde   : > { %p2849_p7 = pnand %p2847_p5, %p3218_p8 }
  0xdf   : > { %p2856_p11 = por %p2855_p10, %p2854_p4 }
  0xe0   : > { %p2850_p9 = pneg %p2849_p7 }
  0xe2   : > { %p2857_p12 = pnand %p2856_p11, %p2850_p9 }
  0xe4   : > { %2860 = shalt.err (!%p2857_p12)
}
  0xe5   : > { %2466 = dma.hbm_to_vmem [thread:$0]  (!%p3202_p6), %s3800_s6, 16, %s417_s1, [#allocation12]  }
  0xe6   : > { %s3078_s23 = smov [#allocation16]   ;;  %s3079_s13 = smov [#allocation19]  }
  0xe7   : > { %s440_s15 = sshll.u32 %s3078_s23, 4  ;;  %s464_s24 = sshll.u32 %s3079_s13, 4  ;;  %s441_s15 = int_to_ptr.vmem [resolvable:$true] %s440_s15  ;;  %s465_s24 = int_to_ptr.vmem [resolvable:$true] %s464_s24 }
  0xe8   : > { %s2861_s29 = scalar_lea.hbm %s3802_s8, 16 }
  0xe9   : > { %p2862_p1 = scmp.ne.s32.totalorder %s3802_s8, %s2861_s29  ;;  %p2868_p0 = scmp.lt.u32.totalorder %s2861_s29, %s3802_s8 }
  0xeb   : > { %p2864_p3 = pnand %p2862_p1, %p3218_p8 }
  0xed   : > { %p2865_p13 = pneg %p2864_p3 }
  0xef   : > { %p2870_p2 = pnand %p2868_p0, %p2865_p13 }
  0xf1   : > { %2873 = shalt.err (!%p2870_p2)
}
  0xf2   : > { %s2874_s1 = scalar_lea.vmem %s441_s15, 16  ;;  %s2881_s25 = scalar_lea.vmem %s441_s15, 32 }
  0xf3   : > { %p2875_p5 = scmp.ne.s32.totalorder %s441_s15, %s2874_s1  ;;  %p2882_p4 = scmp.lt.s32.totalorder %s441_s15, %s441_s15 }
  0xf4   : > { %p2883_p10 = scmp.lt.s32.totalorder %s2881_s25, %s2874_s1 }
  0xf5   : > { %p2877_p7 = pnand %p2875_p5, %p3218_p8 }
  0xf6   : > { %p2884_p11 = por %p2883_p10, %p2882_p4 }
  0xf7   : > { %p2878_p9 = pneg %p2877_p7 }
  0xf9   : > { %p2885_p12 = pnand %p2884_p11, %p2878_p9 }
  0xfb   : > { %2888 = shalt.err (!%p2885_p12)
}
  0xfc   : > { %2472 = dma.hbm_to_vmem [thread:$0]  (!%p3202_p6), %s3802_s8, 16, %s441_s15, [#allocation15]  }
  0xfd   : > { %s2889_s22 = scalar_lea.hbm %s3804_s10, 16 }
  0xfe   : > { %p2890_p1 = scmp.ne.s32.totalorder %s3804_s10, %s2889_s22  ;;  %p2896_p0 = scmp.lt.u32.totalorder %s2889_s22, %s3804_s10 }
 0x100   : > { %p2892_p3 = pnand %p2890_p1, %p3218_p8 }
 0x102   : > { %p2893_p13 = pneg %p2892_p3 }
 0x104   : > { %p2898_p2 = pnand %p2896_p0, %p2893_p13 }
 0x106   : > { %2901 = shalt.err (!%p2898_p2)
}
 0x107   : > { %s2902_s30 = scalar_lea.vmem %s465_s24, 16  ;;  %s2909_s15 = scalar_lea.vmem %s465_s24, 32 }
 0x108   : > { %p2903_p5 = scmp.ne.s32.totalorder %s465_s24, %s2902_s30  ;;  %p2910_p4 = scmp.lt.s32.totalorder %s465_s24, %s465_s24 }
 0x109   : > { %p2911_p10 = scmp.lt.s32.totalorder %s2909_s15, %s2902_s30 }
 0x10a   : > { %p2905_p7 = pnand %p2903_p5, %p3218_p8 }
 0x10b   : > { %p2912_p11 = por %p2911_p10, %p2910_p4 }
 0x10c   : > { %p2906_p9 = pneg %p2905_p7 }
 0x10e   : > { %p2913_p12 = pnand %p2912_p11, %p2906_p9 }
 0x110   : > { %2916 = shalt.err (!%p2913_p12)
}
 0x111   : > { %2478 = dma.hbm_to_vmem [thread:$0]  (!%p3202_p6), %s3804_s10, 16, %s465_s24, [#allocation18]  }
 0x112   : > { %s3080_s25 = smov [#allocation22]   ;;  %s2917_s13 = scalar_lea.hbm %s3806_s12, 16 }
 0x113   : > { %s486_s20 = sshll.u32 %s3080_s25, 4  ;;  %p2918_p1 = scmp.ne.s32.totalorder %s3806_s12, %s2917_s13  ;;  %s487_s20 = int_to_ptr.vmem [resolvable:$true] %s486_s20 }
 0x114   : > { %p2924_p0 = scmp.lt.u32.totalorder %s2917_s13, %s3806_s12 }
 0x115   : > { %p2920_p3 = pnand %p2918_p1, %p3218_p8 }
 0x117   : > { %p2921_p13 = pneg %p2920_p3 }
 0x119   : > { %p2926_p2 = pnand %p2924_p0, %p2921_p13 }
 0x11b   : > { %2929 = shalt.err (!%p2926_p2)
}
 0x11c   : > { %s2930_s24 = scalar_lea.vmem %s487_s20, 16  ;;  %s2937_s17 = scalar_lea.vmem %s487_s20, 32 }
 0x11d   : > { %p2931_p5 = scmp.ne.s32.totalorder %s487_s20, %s2930_s24  ;;  %p2938_p4 = scmp.lt.s32.totalorder %s487_s20, %s487_s20 }
 0x11e   : > { %p2939_p10 = scmp.lt.s32.totalorder %s2937_s17, %s2930_s24 }
 0x11f   : > { %p2933_p7 = pnand %p2931_p5, %p3218_p8 }
 0x120   : > { %p2940_p11 = por %p2939_p10, %p2938_p4 }
 0x121   : > { %p2934_p9 = pneg %p2933_p7 }
 0x123   : > { %p2941_p12 = pnand %p2940_p11, %p2934_p9 }
 0x125   : > { %2944 = shalt.err (!%p2941_p12)
}
 0x126   : > { %s3832_s16 = sld [smem:[#allocation32_spill]]  ;;  %s3833_s0 = sld [smem:[#allocation33_spill]] }
 0x127   : > { %2484 = dma.hbm_to_vmem [thread:$0]  (!%p3202_p6), %s3806_s12, 16, %s487_s20, [#allocation21]  }
 0x128   : > { %s2208_s1 = sadd.s32 4294967294, %s3065_s28   ;;  %s3462_s18 = sadd.s32 1, %s3065_s28  }
 0x129   : > { %s39_s25 = ssub.s32 %s3065_s28, %s3462_s18  ;;  %s42_s19 = sadd.s32 1, %s3061_s27 }
 0x12a   : > { %p40_p8 = scmp.eq.s32.totalorder %s39_s25, 0  ;;  %p49_p1 = scmp.ne.s32.totalorder %s3061_s27, %s3057_s26 }
 0x12b   : > { %p50_p3 = scmp.eq.s32.totalorder %s3065_s28, 0  ;;  %p337_p7 = scmp.eq.s32.totalorder %s2208_s1, 1 }
 0x12c   : > { %p55_p13 = scmp.ne.s32.totalorder %s3057_s26, %s3832_s16  ;;  %p3835_p2 = scmp.eq.s32.totalorder %s3833_s0, 0 }
 0x12d   : > { %s3473_s23 = scalar_select %p40_p8, %s3061_s27, %s42_s19  }
 0x12e   : > { %p3475_p0 = por %p50_p3, %p49_p1  ;;  %p3481_p6 = por %p3835_p2, %p55_p13 }
 0x12f   : > { %p331_p5 = scmp.eq.s32.totalorder %s3833_s0, 1  ;;  %p2505_p9 = scmp.lt.s32.totalorder %s3065_s28, 2 }
 0x130   : > { %s497_s22 = sand.u32 1, %s3061_s27   ;;  %p3492_p10 = por %p337_p7, %p55_p13 }
 0x131   : > { %p3488_p4 = por %p331_p5, %p49_p1  ;;  %s2223_s21 = sshll.u32 %s497_s22, 3 }
 0x132   : > { %s3838_s29 = scalar_select %p3492_p10, 1, 0 }
 0x133   : > { %s3837_s14 = scalar_select %p3488_p4, 1, 0 }
 0x134   : > { %s2224_s24 = sshll.u32 %s3065_s28, 7  ;;  %s3839_s15 = sld [smem:[#allocation35_spill]] }
 0x135   : > { %s501_s0 = scalar_lea.vmem [#allocation2], %s2223_s21  ;;  %p3506_p11 = pnand %p2505_p9, %p3475_p0 }
 0x136   : > { %s508_s1 = sshll.u32 %s501_s0, 4  ;;  %s498_s19 = scalar_lea.sflag [#allocation3], %s497_s22  ;;  %s3502_s1 = int_to_ptr.vmem [resolvable:$true] %s508_s1 }
 0x137   : > { %p2947_p8 = pneg %p3506_p11 }
 0x13a   : > { %s3500_s16 = scalar_lea.hbm %s3839_s15, %s2224_s24  ;;  %s2950_s17 = scalar_lea.hbm %s3839_s15, 256 }
 0x13b   : > { %s2945_s2 = scalar_lea.hbm %s3500_s16, 128  ;;  %p2951_p13 = scmp.lt.u32.totalorder %s3500_s16, %s3839_s15 }
 0x13c   : > { %p2946_p12 = scmp.ne.s32.totalorder %s3500_s16, %s2945_s2  ;;  %p2952_p0 = scmp.lt.u32.totalorder %s2950_s17, %s2945_s2 }
 0x13d   : > { %p2954_p5 = scmp.lt.u32.totalorder %s2945_s2, %s3500_s16 }
 0x13e   : > { %p2948_p1 = pnand %p2947_p8, %p2946_p12  ;;  %p2953_p2 = por %p2952_p0, %p2951_p13 }
 0x140   : > { %p2949_p3 = pneg %p2948_p1  ;;  %p2955_p7 = por %p2954_p5, %p2953_p2 }
 0x142   : > { %p2956_p9 = pnand %p2955_p7, %p2949_p3 }
 0x144   : > { %2959 = shalt.err (!%p2956_p9)
}
 0x145   : > { %s2960_s22 = scalar_lea.vmem %s3502_s1, 128  ;;  %s3081_s0 = smov [#allocation2]  }
 0x146   : > { %p2961_p12 = scmp.ne.s32.totalorder %s3502_s1, %s2960_s22  ;;  %s2965_s21 = sshll.u32 %s3081_s0, 4  ;;  %s2966_s21 = int_to_ptr.vmem [resolvable:$false] %s2965_s21 }
 0x147   : > { %s2967_s24 = scalar_lea.vmem %s2966_s21, 256  ;;  %p2968_p4 = scmp.lt.s32.totalorder %s3502_s1, %s2966_s21 }
 0x148   : > { %p2963_p1 = pnand %p2961_p12, %p2947_p8  ;;  %p2969_p13 = scmp.lt.s32.totalorder %s2967_s24, %s2960_s22 }
 0x14a   : > { %p2964_p10 = pneg %p2963_p1  ;;  %p2970_p0 = por %p2969_p13, %p2968_p4 }
 0x14c   : > { %p2971_p2 = pnand %p2970_p0, %p2964_p10 }
 0x14e   : > { %2974 = shalt.err (!%p2971_p2)
}
 0x14f   : > { %2488 = dma.hbm_to_vmem [thread:$0]  (!%p3506_p11), %s3500_s16, 128, %s3502_s1, %s498_s19  }
 0x150   : > { %s3841_s2 = sld [smem:[#allocation34_spill]] }
 0x156   : > { %p3842_p3 = scmp.ne.s32.totalorder %s3841_s2, 0 }
 0x157   : > { %s3538_s17 = sand.u32 (!%p3842_p3), 1, %s3057_s26  }
 0x158   : > { %517 = sbr.rel (%p3842_p3) target bundleno = 2951 (0xb87), region = 72  ;;  %s2226_s13 = sshll.u32 (!%p3842_p3), %s3538_s17, 3 }
 0x159   : > { %s520_s30 = scalar_lea.sflag (!%p3842_p3), [#allocation3], %s3538_s17  ;;  %s523_s22 = scalar_lea.vmem (!%p3842_p3), [#allocation2], %s2226_s13 }
 0x15f   : > { %3020 = dma.done.wait (%p3481_p6), %s520_s30, 128  }
 0x160   : > { %3022 = vsyncadd (%p3481_p6), %s520_s30, 4294967168  ;;  %s3843_s16 = sld [smem:[#allocation33_spill]] }
 0x166   : > { %p3844_p4 = scmp.eq.s32.totalorder %s3843_s16, 0 }
 0x168   : > { %3024 = dma.done.wait (%p3844_p4), [#allocation6], 272   ;;  %p3845_p10 = pmov %p3844_p4 }
 0x169   : > { %p3846_p11 = pmov %p3844_p4 }
 0x16a   : > { %3026 = vsyncadd (%p3845_p10), [#allocation6], 4294967024 }
 0x16b   : > { %3028 = dma.done.wait (%p3846_p11), [#allocation9], 272   ;;  %p3847_p8 = pmov %p3844_p4 }
 0x16c   : > { %p3848_p5 = pmov %p3844_p4 }
 0x16d   : > { %3030 = vsyncadd (%p3847_p8), [#allocation9], 4294967024 }
 0x16e   : > { %3032 = dma.done.wait (%p3848_p5), [#allocation12], 32   ;;  %p3849_p7 = pmov %p3844_p4 }
 0x16f   : > { %p3850_p6 = pmov %p3844_p4 }
 0x170   : > { %3034 = vsyncadd (%p3849_p7), [#allocation12], 4294967264 }
 0x171   : > { %3036 = dma.done.wait (%p3850_p6), [#allocation15], 272   ;;  %p3851_p9 = pmov %p3844_p4 }
 0x172   : > { %p3852_p12 = pmov %p3844_p4 }
 0x173   : > { %3038 = vsyncadd (%p3851_p9), [#allocation15], 4294967024 }
 0x174   : > { %3040 = dma.done.wait (%p3852_p12), [#allocation18], 528   ;;  %p3853_p1 = pmov %p3844_p4 }
 0x176   : > { %3042 = vsyncadd (%p3853_p1), [#allocation18], 4294966768  ;;  %p3854_p13 = pmov %p3853_p1 }
 0x177   : > { %p3855_p0 = pmov %p3853_p1 }
 0x178   : > { %3044 = dma.done.wait (%p3854_p13), [#allocation21], 32  }
 0x179   : > { %3046 = vsyncadd (%p3855_p0), [#allocation21], 4294967264  ;;  %v3082_v0 = vmov 0.0   ;;  %vm3083_vm0 = vmmov 0   ;;  %v2577_v1 = vld [vmem:[#allocation5] sm:$0xff]   ;;  %v2578_v2 = vld [vmem:[#allocation5 + $0x8] sm:$0xff]   ;;  %v699_v16 = vlaneseq }
 0x17a   : > { %2312 = vmatprep.subr.bf16.mxu0 %v3082_v0  ;;  %2316 = vmatprep.mubr.msk.bf16.mxu0 %vm3083_vm0, %v3082_v0  ;;  %v3578_v3 = vld [vmem:[%s523_s22] sm:$0xff]  ;;  %vm640_vm1 = vcmask 261120   ;;  %s3084_s20 = smov 104   ;;  %s3085_s1 = smov 120   ;;  %v3089_v14 = vmov 1983009808  }
 0x17b   : > { %2320 = vmatprep.subr.bf16.mxu1 %v3082_v0  ;;  %2322 = vmatprep.mubr.msk.bf16.mxu1 %vm3083_vm0, %v3082_v0  ;;  %v616_v4 = vpack.c.bf16 %v3578_v3, %v3578_v3  ;;  %v2240_v5 = vld [vmem:[#allocation7] ss:$0 sm:$0xff]  ;;  %s3086_s25 = smov 96   ;;  %s3087_s19 = smov 112   ;;  %v697_v15 = vunpack.c.l.s4 %v3089_v14  ;;  %v700_v18 = vshrl.u32 %v699_v16, 7  ;;  %vm1138_vm2 = vcmask 64512  }
 0x17c   : > { %2313 = vmatpush3.bf16.msra.mxu0 %v2577_v1  ;;  %s3088_s0 = smov 64   ;;  %v3090_v19 = vmov 1934713408   ;;  %vm1382_vm3 = vcmask 1043456   ;;  %s3091_s21 = smov 16   ;;  %vm1721_vm4 = vcmask 130048  }
 0x17d   : > { %2314 = vmatprep.subr.bf16.mxu0 %v3082_v0  ;;  %v698_v17 = vunpack.c.0.s8 %v697_v15  ;;  %v729_v20 = vunpack.c.l.s4 %v3090_v19  ;;  %s3092_s24 = smov 8   ;;  %s3093_s2 = smov 24   ;;  %vm1723_vm5 = vcmask 195584   ;;  %vm1935_vm6 = vcmask 523264  }
 0x17e   : > { %s2279_s30 = sshll.u32 %s3843_s16, 7  ;;  %s613_s22 = scalar_lea.vmem [#allocation23], %s2226_s13 }
 0x17f   : > { %v3597_v23 = vsub.s32 %v698_v17, %v700_v18  ;;  %v730_v26 = vunpack.c.0.s8 %v729_v20  ;;  %p3857_p3 = scmp.ne.s32.totalorder %s3837_s14, 0  ;;  %s3094_s13 = smov [#allocation23]  }
 0x180   : > { %2315 = vmatpush3.bf16.msra.mxu0 %v2578_v2  ;;  %s2979_s16 = sshll.u32 %s3094_s13, 4  ;;  %s2980_s16 = int_to_ptr.vmem [resolvable:$false] %s2979_s16 }
 0x181   : > { %2326 = vmatprep.subr.bf16.mxu0 %v3082_v0  ;;  %v3605_v33 = vsub.s32 %v730_v26, %v700_v18 }
 0x183   : > { %2317 = vmatmul.mubr.msk.bf16.vlgmr.msra.gmra.mrb[0].mxu0 %vm640_vm1, %v616_v4 }
 0x184   : > { %2328 = vmatprep.mubr.msk.bf16.mxu0 %vm3083_vm0, %v3082_v0 }
 0x256   : > { %v678_v6 = vpop.f32.mrb[0].mxu0 }
 0x257   : > { %v679_v7 = vadd.f32 %v2240_v5, %v678_v6  ;;  %v2318_v8 = vpop.f32.mrb[1].mxu0 }
 0x258   : > { %v681_v9 = vpop.f32.mrb[2].mxu0 }
 0x259   : > { %691 = vrot.lane.b32.xlu1 %v679_v7, %s3084_s20  ;;  %685 = vrot.lane.b32.xlu0 %v679_v7, %s3085_s1  ;;  %v2319_v10 = vpop.f32.mrb[3].mxu0  ;;  %s2024_s20 = sshll.u32 %s613_s22, 4  ;;  %s3751_s20 = int_to_ptr.vmem [resolvable:$true] %s2024_s20 }
 0x25a   : > { %p2982_p11 = scmp.lt.s32.totalorder %s3751_s20, %s2980_s16 }
 0x25d   : > { %834 = vrot.lane.b32.xlu1 %v679_v7, %s3086_s25  ;;  %688 = vrot.lane.b32.xlu0 %v679_v7, %s3087_s19  ;;  %s3856_s19 = sld [smem:[#allocation38_spill]] }
 0x2cb   : > { %v686_v11 = vpop.permute.xlu0 %685  ;;  %v3587_v12 = vpop.permute.xlu1 %691 }
 0x2cc   : > { %836 = vrot.lane.b32.xlu0 %v686_v11, %s3086_s25  ;;  %v710_v24 = vcombine.low %v686_v11, %v3587_v12  ;;  %v711_v25 = vcombine.high %v686_v11, %v3587_v12 }
 0x2ce   : > { %v718_v29 = vrot.slane %v710_v24, %v3597_v23  ;;  %v725_v30 = vrot.slane %v711_v25, %v3597_v23 }
 0x2cf   : > { %v3589_v13 = vpop.permute.xlu0 %688  ;;  %v835_v31 = vpop.permute.xlu1 %834 }
 0x2d0   : > { %840 = vrot.lane.b32.xlu0 %v3587_v12, %s3086_s25  ;;  %838 = vrot.lane.b32.xlu1 %v3589_v13, %s3086_s25  ;;  %v694_v21 = vcombine.low %v679_v7, %v3589_v13  ;;  %v695_v22 = vcombine.high %v679_v7, %v3589_v13 }
 0x2d2   : > { %v702_v27 = vrot.slane %v694_v21, %v3597_v23  ;;  %v709_v28 = vrot.slane %v695_v22, %v3597_v23 }
 0x2d4   : > { %986 = vrot.lane.b32.xlu0 %v679_v7, %s3088_s0  ;;  %988 = vrot.lane.b32.xlu1 %v686_v11, %s3088_s0  ;;  %v726_v34 = vcombine.low %v702_v27, %v718_v29  ;;  %v727_v35 = vcombine.high %v702_v27, %v718_v29  ;;  %v742_v36 = vcombine.low %v709_v28, %v725_v30 }
 0x2d5   : > { %v743_v37 = vcombine.high %v709_v28, %v725_v30 }
 0x2d6   : > { %v734_v44 = vrot.slane %v726_v34, %v3605_v33  ;;  %v741_v45 = vrot.slane %v727_v35, %v3605_v33  ;;  %v750_v46 = vrot.slane %v742_v36, %v3605_v33 }
 0x2d7   : > { %v757_v47 = vrot.slane %v743_v37, %v3605_v33 }
 0x2d8   : > { %v762_v56 = vcombine.low %v734_v44, %v741_v45  ;;  %v2244_v57 = vcombine.high %v734_v44, %v741_v45 }
 0x2d9   : > { %v778_v58 = vcombine.low %v750_v46, %v757_v47  ;;  %v2245_v59 = vcombine.high %v750_v46, %v757_v47 }
 0x2da   : > { %v769_v6 = vrot.slane %v762_v56, %v3597_v23  ;;  %v777_v7 = vrot.slane %v2244_v57, %v3597_v23 }
 0x2db   : > { %v785_v8 = vrot.slane %v778_v58, %v3597_v23  ;;  %v793_v9 = vrot.slane %v2245_v59, %v3597_v23 }
 0x2dc   : > { %v794_v22 = vcombine.low %v769_v6, %v777_v7 }
 0x2dd   : > { %v810_v24 = vcombine.low %v785_v8, %v793_v9 }
 0x33e   : > { %v837_v32 = vpop.permute.xlu0 %836 }
 0x342   : > { %v839_v38 = vpop.permute.xlu1 %838  ;;  %v841_v39 = vpop.permute.xlu0 %840 }
 0x343   : > { %v846_v40 = vcombine.low %v835_v31, %v839_v38  ;;  %v847_v41 = vcombine.high %v835_v31, %v839_v38  ;;  %v862_v42 = vcombine.low %v837_v32, %v841_v39  ;;  %v863_v43 = vcombine.high %v837_v32, %v841_v39 }
 0x344   : > { %v802_v31 = vrot.slane %v794_v22, %v3605_v33  ;;  %v818_v32 = vrot.slane %v810_v24, %v3605_v33  ;;  %v795_v38 = vcombine.high %v769_v6, %v777_v7  ;;  %v811_v39 = vcombine.high %v785_v8, %v793_v9 }
 0x345   : > { %v854_v48 = vrot.slane %v846_v40, %v3597_v23  ;;  %v861_v49 = vrot.slane %v847_v41, %v3597_v23  ;;  %v870_v50 = vrot.slane %v862_v42, %v3597_v23  ;;  %v877_v51 = vrot.slane %v863_v43, %v3597_v23 }
 0x346   : > { %v826_v40 = vcombine.low %v802_v31, %v818_v32  ;;  %v827_v41 = vcombine.high %v802_v31, %v818_v32  ;;  %v809_v46 = vrot.slane %v795_v38, %v3605_v33  ;;  %v825_v47 = vrot.slane %v811_v39, %v3605_v33 }
 0x347   : > { %v878_v52 = vcombine.low %v854_v48, %v870_v50  ;;  %v879_v53 = vcombine.high %v854_v48, %v870_v50  ;;  %v894_v54 = vcombine.low %v861_v49, %v877_v51  ;;  %v895_v55 = vcombine.high %v861_v49, %v877_v51 }
 0x348   : > { %v830_v44 = vpack.c.bf16 %v826_v40, %v826_v40  ;;  %v831_v45 = vpack.c.bf16 %v827_v41, %v827_v41  ;;  %v828_v50 = vcombine.low %v809_v46, %v825_v47  ;;  %v829_v51 = vcombine.high %v809_v46, %v825_v47 }
 0x349   : > { %v886_v60 = vrot.slane %v878_v52, %v3605_v33  ;;  %v893_v61 = vrot.slane %v879_v53, %v3605_v33  ;;  %v902_v62 = vrot.slane %v894_v54, %v3605_v33  ;;  %v909_v63 = vrot.slane %v895_v55, %v3605_v33 }
 0x34a   : > { %v832_v52 = vpack.c.bf16 %v828_v50, %v828_v50  ;;  %v833_v53 = vpack.c.bf16 %v829_v51, %v829_v51 }
 0x34b   : > { %v914_v1 = vcombine.low %v886_v60, %v893_v61  ;;  %v2246_v2 = vcombine.high %v886_v60, %v893_v61  ;;  %v930_v4 = vcombine.low %v902_v62, %v909_v63  ;;  %v2247_v5 = vcombine.high %v902_v62, %v909_v63 }
 0x34d   : > { %v921_v10 = vrot.slane %v914_v1, %v3597_v23  ;;  %v929_v11 = vrot.slane %v2246_v2, %v3597_v23  ;;  %v937_v14 = vrot.slane %v930_v4, %v3597_v23  ;;  %v945_v15 = vrot.slane %v2247_v5, %v3597_v23 }
 0x34f   : > { %v946_v16 = vcombine.low %v921_v10, %v929_v11  ;;  %v962_v17 = vcombine.low %v937_v14, %v945_v15  ;;  %v947_v18 = vcombine.high %v921_v10, %v929_v11  ;;  %v963_v19 = vcombine.high %v937_v14, %v945_v15  ;;  %v989_v14 = vpop.permute.xlu1 %988  ;;  %v987_v15 = vpop.permute.xlu0 %986 }
 0x351   : > { %v954_v20 = vrot.slane %v946_v16, %v3605_v33  ;;  %v970_v21 = vrot.slane %v962_v17, %v3605_v33  ;;  %v961_v27 = vrot.slane %v947_v18, %v3605_v33  ;;  %v977_v28 = vrot.slane %v963_v19, %v3605_v33 }
 0x353   : > { %v978_v25 = vcombine.low %v954_v20, %v970_v21  ;;  %v979_v26 = vcombine.high %v954_v20, %v970_v21  ;;  %v980_v36 = vcombine.low %v961_v27, %v977_v28  ;;  %v981_v37 = vcombine.high %v961_v27, %v977_v28 }
 0x355   : > { %v982_v29 = vpack.c.bf16 %v978_v25, %v978_v25  ;;  %v983_v30 = vpack.c.bf16 %v979_v26, %v979_v26  ;;  %v984_v42 = vpack.c.bf16 %v980_v36, %v980_v36  ;;  %v985_v43 = vpack.c.bf16 %v981_v37, %v981_v37 }
 0x357   : > { %v1143_v34 = vsel %vm1138_vm2, %v982_v29, 0  ;;  %v1189_v35 = vsel %vm1138_vm2, %v983_v30, 0  ;;  %v1235_v48 = vsel %vm1138_vm2, %v984_v42, 0  ;;  %v1281_v49 = vsel %vm1138_vm2, %v985_v43, 0 }
 0x358   : > { %2321 = vmatpush3.bf16.xpose.msra.mxu1 %v1143_v34  ;;  %2327 = vmatpush3.bf16.xpose.msra.mxu0 %v1189_v35 }
 0x359   : > { %2332 = vmatprep.subr.bf16.mxu1 %v3082_v0  ;;  %2338 = vmatprep.subr.bf16.mxu0 %v3082_v0 }
 0x35f   : > { %2323 = vmatmul.mubr.msk.bf16.vlgmr.msra.gmra.mrb[0].mxu1 %vm1138_vm2, %v830_v44  ;;  %2329 = vmatmul.mubr.msk.bf16.vlgmr.msra.gmra.mrb[4].mxu0 %vm1138_vm2, %v831_v45 }
 0x360   : > { %2333 = vmatpush3.bf16.xpose.msra.mxu1 %v1235_v48  ;;  %2339 = vmatpush3.bf16.xpose.msra.mxu0 %v1281_v49 }
 0x361   : > { %2334 = vmatprep.mubr.msk.bf16.mxu1 %vm3083_vm0, %v3082_v0  ;;  %2340 = vmatprep.mubr.msk.bf16.mxu0 %vm3083_vm0, %v3082_v0 }
 0x362   : > { %2344 = vmatprep.subr.bf16.mxu1 %v3082_v0  ;;  %2350 = vmatprep.subr.bf16.mxu0 %v3082_v0 }
 0x367   : > { %2335 = vmatmul.mubr.msk.bf16.vlgmr.msra.gmra.mrb[4].mxu1 %vm1138_vm2, %v832_v52  ;;  %2341 = vmatmul.mubr.msk.bf16.vlgmr.msra.gmra.mrb[8].mxu0 %vm1138_vm2, %v833_v53 }
 0x368   : > { %2346 = vmatprep.mubr.msk.bf16.mxu1 %vm3083_vm0, %v3082_v0  ;;  %2352 = vmatprep.mubr.msk.bf16.mxu0 %vm3083_vm0, %v3082_v0 }
 0x432   : > { %v1179_v54 = vpop.f32.mrb[0].mxu1  ;;  %v1225_v55 = vpop.f32.mrb[4].mxu0 }
 0x433   : > { %v2324_v56 = vpop.f32.mrb[1].mxu1  ;;  %v2330_v57 = vpop.f32.mrb[5].mxu0  ;;  %v1323_v58 = vsel %vm1138_vm2, %v1179_v54, -inf  ;;  %v1326_v59 = vsel %vm1138_vm2, %v1225_v55, -inf }
 0x434   : > { %1324 = vmax.xlane.f32.xlu1 %v1323_v58  ;;  %v1182_v60 = vpop.f32.mrb[2].mxu1  ;;  %1327 = vmax.xlane.f32.xlu0 %v1326_v59  ;;  %v1228_v61 = vpop.f32.mrb[6].mxu0 }
 0x435   : > { %v2325_v62 = vpop.f32.mrb[3].mxu1  ;;  %v2331_v63 = vpop.f32.mrb[7].mxu0 }
 0x43a   : > { %v3657_v1 = vpop.f32.mrb[4].mxu1  ;;  %v3659_v2 = vpop.f32.mrb[8].mxu0 }
 0x43b   : > { %v2336_v4 = vpop.f32.mrb[5].mxu1  ;;  %v2342_v5 = vpop.f32.mrb[9].mxu0  ;;  %v1329_v10 = vsel %vm1138_vm2, %v3657_v1, -inf  ;;  %v1332_v11 = vsel %vm1138_vm2, %v3659_v2, -inf }
 0x43c   : > { %v1274_v6 = vpop.f32.mrb[6].mxu1  ;;  %v1320_v7 = vpop.f32.mrb[10].mxu0 }
 0x43d   : > { %v2337_v8 = vpop.f32.mrb[7].mxu1  ;;  %v2343_v9 = vpop.f32.mrb[11].mxu0 }
 0x445   : > { %990 = vrot.lane.b32.xlu1 %v3589_v13, %s3088_s0 }
 0x44a   : > { %992 = vrot.lane.b32.xlu0 %v3587_v12, %s3088_s0  ;;  %s3749_s0 = scalar_lea.hbm %s3856_s19, %s2279_s30 }
 0x469   : > { %1330 = vmax.xlane.f32.xlu1 %v1329_v10  ;;  %1333 = vmax.xlane.f32.xlu0 %v1332_v11 }
 0x4c1   : > { %v1325_v16 = vpop.xlane.xlu1 %1324  ;;  %v1328_v17 = vpop.xlane.xlu0 %1327 }
 0x4c2   : > { %v1335_v18 = vsub.f32 %v1179_v54, %v1325_v16  ;;  %v1336_v19 = vsub.f32 %v1225_v55, %v1328_v17 }
 0x4c4   : > { %v1339_v20 = vpack.c.bf16 %v1335_v18, %v1335_v18  ;;  %v1340_v21 = vpack.c.bf16 %v1336_v19, %v1336_v19 }
 0x4c5   : > { %v991_v13 = vpop.permute.xlu1 %990  ;;  %v993_v22 = vpop.permute.xlu0 %992 }
 0x4c6   : > { %v1344_v24 = vmul.bf16 1069105081, %v1339_v20  ;;  %v1347_v12 = vmul.bf16 1069105081, %v1340_v21  ;;  %v998_v25 = vcombine.low %v987_v15, %v991_v13  ;;  %v999_v26 = vcombine.high %v987_v15, %v991_v13 }
 0x4c7   : > { %v1014_v27 = vcombine.low %v989_v14, %v993_v22  ;;  %v1015_v28 = vcombine.high %v989_v14, %v993_v22 }
 0x4c8   : > { %2587 = vpow.bf16 %v1344_v24  ;;  %v1006_v29 = vrot.slane %v998_v25, %v3597_v23  ;;  %v1013_v30 = vrot.slane %v999_v26, %v3597_v23 }
 0x4c9   : > { %2589 = vpow.bf16 %v1347_v12  ;;  %v1022_v31 = vrot.slane %v1014_v27, %v3597_v23  ;;  %v1029_v32 = vrot.slane %v1015_v28, %v3597_v23 }
 0x4cb   : > { %v1030_v34 = vcombine.low %v1006_v29, %v1022_v31  ;;  %v1031_v35 = vcombine.high %v1006_v29, %v1022_v31  ;;  %v1046_v36 = vcombine.low %v1013_v30, %v1029_v32  ;;  %v1047_v37 = vcombine.high %v1013_v30, %v1029_v32 }
 0x4cd   : > { %v1038_v38 = vrot.slane %v1030_v34, %v3605_v33  ;;  %v1045_v39 = vrot.slane %v1031_v35, %v3605_v33  ;;  %v1054_v40 = vrot.slane %v1046_v36, %v3605_v33  ;;  %v1061_v41 = vrot.slane %v1047_v37, %v3605_v33 }
 0x4cf   : > { %v1066_v42 = vcombine.low %v1038_v38, %v1045_v39  ;;  %v2248_v43 = vcombine.high %v1038_v38, %v1045_v39  ;;  %v1082_v44 = vcombine.low %v1054_v40, %v1061_v41  ;;  %v2249_v45 = vcombine.high %v1054_v40, %v1061_v41 }
 0x4d1   : > { %v1073_v46 = vrot.slane %v1066_v42, %v3597_v23  ;;  %v1081_v47 = vrot.slane %v2248_v43, %v3597_v23  ;;  %v1089_v48 = vrot.slane %v1082_v44, %v3597_v23  ;;  %v1097_v49 = vrot.slane %v2249_v45, %v3597_v23 }
 0x4d3   : > { %v2588_v50 = vpop.eup %2587  ;;  %v1098_v51 = vcombine.low %v1073_v46, %v1081_v47  ;;  %v1114_v52 = vcombine.low %v1089_v48, %v1097_v49  ;;  %v1099_v53 = vcombine.high %v1073_v46, %v1081_v47  ;;  %v1115_v54 = vcombine.high %v1089_v48, %v1097_v49 }
 0x4d4   : > { %v2590_v55 = vpop.eup %2589  ;;  %v1355_v56 = vunpack.c.l.bf16 %v2588_v50 }
 0x4d5   : > { %v1356_v57 = vunpack.c.l.bf16 %v2590_v55  ;;  %v1106_v58 = vrot.slane %v1098_v51, %v3605_v33  ;;  %v1122_v59 = vrot.slane %v1114_v52, %v3605_v33  ;;  %v1113_v60 = vrot.slane %v1099_v53, %v3605_v33 }
 0x4d6   : > { %v1359_v61 = vsel %vm1138_vm2, %v1355_v56, 0.0  ;;  %v1129_v62 = vrot.slane %v1115_v54, %v3605_v33 }
 0x4d7   : > { %v1362_v63 = vsel %vm1138_vm2, %v1356_v57, 0.0  ;;  %1360 = vadd.xlane.f32.xlu0 %v1359_v61  ;;  %v1130_v4 = vcombine.low %v1106_v58, %v1122_v59  ;;  %v1131_v5 = vcombine.high %v1106_v58, %v1122_v59 }
 0x4d8   : > { %1363 = vadd.xlane.f32.xlu1 %v1362_v63  ;;  %v1132_v6 = vcombine.low %v1113_v60, %v1129_v62  ;;  %v1133_v7 = vcombine.high %v1113_v60, %v1129_v62 }
 0x4d9   : > { %v1134_v8 = vpack.c.bf16 %v1130_v4, %v1130_v4  ;;  %v1135_v9 = vpack.c.bf16 %v1131_v5, %v1131_v5 }
 0x4da   : > { %v1136_v14 = vpack.c.bf16 %v1132_v6, %v1132_v6  ;;  %v1137_v15 = vpack.c.bf16 %v1133_v7, %v1133_v7 }
 0x4db   : > { %v1384_v10 = vsel %vm1382_vm3, %v1134_v8, 0  ;;  %v1430_v11 = vsel %vm1382_vm3, %v1135_v9, 0 }
 0x4dc   : > { %2345 = vmatpush3.bf16.msra.mxu1 %v1384_v10  ;;  %2351 = vmatpush3.bf16.msra.mxu0 %v1430_v11  ;;  %v1476_v16 = vsel %vm1382_vm3, %v1136_v14, 0  ;;  %v1522_v17 = vsel %vm1382_vm3, %v1137_v15, 0 }
 0x4dd   : > { %2356 = vmatprep.subr.bf16.mxu1 %v3082_v0  ;;  %2362 = vmatprep.subr.bf16.mxu0 %v3082_v0 }
 0x4df   : > { %2347 = vmatmul.mubr.msk.bf16.vlgmr.msra.gmra.mrb[8].mxu1 %vm1138_vm2, %v2588_v50  ;;  %2353 = vmatmul.mubr.msk.bf16.vlgmr.msra.gmra.mrb[12].mxu0 %vm1138_vm2, %v2590_v55 }
 0x4e0   : > { %2357 = vmatpush3.bf16.msra.mxu1 %v1476_v16  ;;  %2363 = vmatpush3.bf16.msra.mxu0 %v1522_v17 }
 0x4e1   : > { %2358 = vmatprep.mubr.msk.bf16.mxu1 %vm3083_vm0, %v3082_v0  ;;  %2364 = vmatprep.mubr.msk.bf16.mxu0 %vm3083_vm0, %v3082_v0 }
 0x4e2   : > { %2368 = vmatprep.subr.bf16.mxu1 %v3082_v0  ;;  %2376 = vmatprep.subr.bf16.mxu0 %v3082_v0 }
 0x4f6   : > { %v1331_v18 = vpop.xlane.xlu1 %1330  ;;  %v1334_v19 = vpop.xlane.xlu0 %1333 }
 0x4f7   : > { %v1337_v20 = vsub.f32 %v3657_v1, %v1331_v18  ;;  %v1338_v21 = vsub.f32 %v3659_v2, %v1334_v19 }
 0x4f9   : > { %v1341_v13 = vpack.c.bf16 %v1337_v20, %v1337_v20  ;;  %v1342_v22 = vpack.c.bf16 %v1338_v21, %v1338_v21  ;;  %v2579_v20 = vld [vmem:[#allocation8] sm:$0xff]  }
 0x4fb   : > { %v1350_v24 = vmul.bf16 1069105081, %v1341_v13  ;;  %v1353_v12 = vmul.bf16 1069105081, %v1342_v22 }
 0x4fd   : > { %2591 = vpow.bf16 %v1350_v24 }
 0x4fe   : > { %2593 = vpow.bf16 %v1353_v12 }
 0x508   : > { %v2592_v25 = vpop.eup %2591 }
 0x509   : > { %v2594_v26 = vpop.eup %2593  ;;  %2359 = vmatmul.mubr.msk.bf16.vlgmr.msra.gmra.mrb[12].mxu1 %vm1138_vm2, %v2592_v25  ;;  %v1357_v27 = vunpack.c.l.bf16 %v2592_v25 }
 0x50a   : > { %2365 = vmatmul.mubr.msk.bf16.vlgmr.msra.gmra.mrb[16].mxu0 %vm1138_vm2, %v2594_v26  ;;  %v1358_v28 = vunpack.c.l.bf16 %v2594_v26  ;;  %2372 = vmatprep.mubr.msk.bf16.mxu1 %vm3083_vm0, %v3082_v0 }
 0x50b   : > { %v1365_v1 = vsel %vm1138_vm2, %v1357_v27, 0.0  ;;  %2380 = vmatprep.mubr.msk.bf16.mxu0 %vm3083_vm0, %v3082_v0  ;;  %2369 = vmatpush3.bf16.msra.mxu1 %v2579_v20 }
 0x50c   : > { %1366 = vadd.xlane.f32.xlu0 %v1365_v1  ;;  %v1368_v2 = vsel %vm1138_vm2, %v1358_v28, 0.0  ;;  %2370 = vmatprep.subr.bf16.mxu1 %v3082_v0  ;;  %v2580_v28 = vld [vmem:[#allocation8 + $0x8] sm:$0xff]  }
 0x50d   : > { %1369 = vadd.xlane.f32.xlu1 %v1368_v2 }
 0x50f   : > { %2371 = vmatpush3.bf16.msra.mxu1 %v2580_v28 }
 0x510   : > { %2384 = vmatprep.subr.bf16.mxu1 %v3082_v0 }
 0x564   : > { %v1361_v38 = vpop.xlane.xlu0 %1360 }
 0x565   : > { %v1364_v39 = vpop.xlane.xlu1 %1363  ;;  %v1371_v41 = vpack.c.bf16 %v1361_v38, %v1361_v38 }
 0x566   : > { %v1372_v43 = vpack.c.bf16 %v1364_v39, %v1364_v39 }
 0x567   : > { %v1375_v46 = vunpack.c.l.bf16 %v1371_v41 }
 0x568   : > { %v1376_v47 = vunpack.c.l.bf16 %v1372_v43 }
 0x569   : > { %2595 = vrcp.f32 %v1375_v46 }
 0x56a   : > { %2597 = vrcp.f32 %v1376_v47 }
 0x573   : > { %v2596_v50 = vpop.eup %2595 }
 0x574   : > { %v2598_v51 = vpop.eup %2597 }
 0x599   : > { %v1367_v40 = vpop.xlane.xlu0 %1366 }
 0x59a   : > { %v1370_v42 = vpop.xlane.xlu1 %1369  ;;  %v1373_v44 = vpack.c.bf16 %v1367_v40, %v1367_v40 }
 0x59b   : > { %v1374_v45 = vpack.c.bf16 %v1370_v42, %v1370_v42 }
 0x59c   : > { %v1377_v48 = vunpack.c.l.bf16 %v1373_v44 }
 0x59d   : > { %v1378_v49 = vunpack.c.l.bf16 %v1374_v45 }
 0x59e   : > { %2599 = vrcp.f32 %v1377_v48 }
 0x59f   : > { %2601 = vrcp.f32 %v1378_v49  ;;  %v2260_v49 = vld [vmem:[#allocation10] ss:$0 sm:$0xff] }
 0x5a8   : > { %v2600_v52 = vpop.eup %2599 }
 0x5a9   : > { %v2602_v54 = vpop.eup %2601 }
 0x5b2   : > { %v1420_v29 = vpop.f32.mrb[8].mxu1  ;;  %v1466_v30 = vpop.f32.mrb[12].mxu0 }
 0x5b3   : > { %v2348_v31 = vpop.f32.mrb[9].mxu1  ;;  %v2354_v32 = vpop.f32.mrb[13].mxu0  ;;  %v1568_v55 = vmul.f32 %v2596_v50, %v1420_v29  ;;  %v1569_v59 = vmul.f32 %v2598_v51, %v1466_v30 }
 0x5b4   : > { %v1423_v34 = vpop.f32.mrb[10].mxu1  ;;  %v1469_v35 = vpop.f32.mrb[14].mxu0 }
 0x5b5   : > { %v2349_v36 = vpop.f32.mrb[11].mxu1  ;;  %v2355_v37 = vpop.f32.mrb[15].mxu0 }
 0x5dc   : > { %v1512_v53 = vpop.f32.mrb[12].mxu1 }
 0x5dd   : > { %v1570_v56 = vmul.f32 %v2600_v52, %v1512_v53  ;;  %v1558_v57 = vpop.f32.mrb[16].mxu0  ;;  %v2360_v58 = vpop.f32.mrb[13].mxu1 }
 0x5de   : > { %v1571_v60 = vmul.f32 %v2602_v54, %v1558_v57  ;;  %v2366_v61 = vpop.f32.mrb[17].mxu0  ;;  %v1515_v62 = vpop.f32.mrb[14].mxu1 }
 0x5df   : > { %v1572_v63 = vcombine.low %v1568_v55, %v1570_v56  ;;  %v1573_v4 = vcombine.high %v1568_v55, %v1570_v56  ;;  %v1561_v5 = vpop.f32.mrb[18].mxu0  ;;  %v2361_v6 = vpop.f32.mrb[15].mxu1  ;;  %v2581_v62 = vld [vmem:[#allocation14] sm:$0xff]  }
 0x5e0   : > { %v1588_v7 = vcombine.low %v1569_v59, %v1571_v60  ;;  %v1589_v8 = vcombine.high %v1569_v59, %v1571_v60  ;;  %v2367_v9 = vpop.f32.mrb[19].mxu0  ;;  %2377 = vmatpush3.bf16.msra.mxu0 %v2581_v62 }
 0x5e1   : > { %v1580_v10 = vrot.slane %v1572_v63, %v3597_v23  ;;  %v1587_v11 = vrot.slane %v1573_v4, %v3597_v23  ;;  %v2582_v63 = vld [vmem:[#allocation14 + $0x8] sm:$0xff]   ;;  %2378 = vmatprep.subr.bf16.mxu0 %v3082_v0  ;;  %v2265_v9 = vld [vmem:[#allocation13] ss:$0 sm:$0xff] }
 0x5e2   : > { %v1596_v14 = vrot.slane %v1588_v7, %v3597_v23  ;;  %v1603_v15 = vrot.slane %v1589_v8, %v3597_v23  ;;  %v2264_v7 = vld [vmem:[#allocation11] ss:$0 sm:$0xff] }
 0x5e4   : > { %v1604_v16 = vcombine.low %v1580_v10, %v1596_v14  ;;  %v1605_v17 = vcombine.high %v1580_v10, %v1596_v14  ;;  %v1620_v18 = vcombine.low %v1587_v11, %v1603_v15  ;;  %v1621_v19 = vcombine.high %v1587_v11, %v1603_v15  ;;  %2379 = vmatpush3.bf16.msra.mxu0 %v2582_v63  ;;  %v2583_v15 = vld [vmem:[#allocation17] sm:$0xff]  }
 0x5e6   : > { %v1612_v21 = vrot.slane %v1604_v16, %v3605_v33  ;;  %v1619_v13 = vrot.slane %v1605_v17, %v3605_v33  ;;  %v1628_v22 = vrot.slane %v1620_v18, %v3605_v33  ;;  %v1635_v24 = vrot.slane %v1621_v19, %v3605_v33  ;;  %v2584_v16 = vld [vmem:[#allocation17 + $0x8] sm:$0xff]   ;;  %v2585_v17 = vld [vmem:[#allocation17 + $0x10] sm:$0xff]   ;;  %v2586_v18 = vld [vmem:[#allocation17 + $0x18] sm:$0xff]  }
 0x5e7   : > { %v2266_v19 = vld [vmem:[#allocation16] ss:$0 sm:$0xff] }
 0x5e8   : > { %v1640_v12 = vcombine.low %v1612_v21, %v1619_v13  ;;  %v2258_v25 = vcombine.high %v1612_v21, %v1619_v13  ;;  %v1656_v26 = vcombine.low %v1628_v22, %v1635_v24  ;;  %v2259_v27 = vcombine.high %v1628_v22, %v1635_v24 }
 0x5ea   : > { %v1647_v1 = vrot.slane %v1640_v12, %v3597_v23  ;;  %v1655_v2 = vrot.slane %v2258_v25, %v3597_v23  ;;  %v1663_v29 = vrot.slane %v1656_v26, %v3597_v23  ;;  %v1671_v30 = vrot.slane %v2259_v27, %v3597_v23 }
 0x5ec   : > { %v1673_v31 = vcombine.high %v1647_v1, %v1655_v2  ;;  %v1689_v32 = vcombine.high %v1663_v29, %v1671_v30  ;;  %v1672_v34 = vcombine.low %v1647_v1, %v1655_v2  ;;  %v1688_v35 = vcombine.low %v1663_v29, %v1671_v30  ;;  %v2270_v2 = vld [vmem:[#allocation19] ss:$0 sm:$0xff] }
 0x5ee   : > { %v1687_v36 = vrot.slane %v1673_v31, %v3605_v33  ;;  %v1703_v37 = vrot.slane %v1689_v32, %v3605_v33  ;;  %v1680_v38 = vrot.slane %v1672_v34, %v3605_v33  ;;  %v1696_v39 = vrot.slane %v1688_v35, %v3605_v33 }
 0x5f0   : > { %v1706_v40 = vcombine.low %v1687_v36, %v1703_v37  ;;  %v1705_v41 = vcombine.high %v1680_v38, %v1696_v39  ;;  %v1707_v42 = vcombine.high %v1687_v36, %v1703_v37  ;;  %v1704_v43 = vcombine.low %v1680_v38, %v1696_v39 }
 0x5f2   : > { %1713 = vrot.lane.b32.xlu1 %v1706_v40, %s3091_s21  ;;  %1709 = vrot.lane.b32.xlu0 %v1705_v41, %s3092_s24  ;;  %s2011_s21 = scalar_lea.sflag [#allocation4], %s3538_s17  ;;  %s2975_s24 = scalar_lea.vmem %s3751_s20, 128 }
 0x5f3   : > { %p2976_p2 = scmp.ne.s32.totalorder %s3751_s20, %s2975_s24 }
 0x5f5   : > { %p2977_p4 = pnand %p2976_p2, %p3857_p3 }
 0x5f6   : > { %1717 = vrot.lane.b32.xlu1 %v1707_v42, %s3093_s2  ;;  %s2981_s2 = scalar_lea.vmem %s2980_s16, 256 }
 0x5f7   : > { %p2978_p10 = pneg %p2977_p4  ;;  %p2983_p8 = scmp.lt.s32.totalorder %s2981_s2, %s2975_s24 }
 0x5f9   : > { %p2984_p5 = por %p2983_p8, %p2982_p11 }
 0x5fb   : > { %p2985_p7 = pnand %p2984_p5, %p2978_p10 }
 0x664   : > { %v1714_v23 = vpop.permute.xlu1 %1713  ;;  %v1710_v44 = vpop.permute.xlu0 %1709 }
 0x665   : > { %v1720_v45 = vsel %vm1138_vm2, %v1704_v43, %v1710_v44  ;;  %v2276_v44 = vld [vmem:[#allocation20] ss:$0 sm:$0xff] }
 0x666   : > { %v1722_v47 = vsel %vm1721_vm4, %v1720_v45, %v1714_v23 }
 0x668   : > { %v1718_v46 = vpop.permute.xlu1 %1717 }
 0x669   : > { %v1724_v48 = vsel %vm1723_vm5, %v1722_v47, %v1718_v46  ;;  %v2277_v46 = vld [vmem:[#allocation22] ss:$0 sm:$0xff] }
 0x66a   : > { %v1725_v33 = vpack.c.bf16 %v1724_v48, %v1724_v48 }
 0x66c   : > { %2373 = vmatmul.mubr.msk.bf16.vlgmr.msra.gmra.mrb[16].mxu1 %vm640_vm1, %v1725_v33 }
 0x66d   : > { %2392 = vmatprep.mubr.msk.bf16.mxu1 %vm3083_vm0, %v3082_v0  ;;  %2385 = vmatpush3.bf16.msra.mxu1 %v2583_v15 }
 0x66e   : > { %2386 = vmatprep.subr.bf16.mxu1 %v3082_v0 }
 0x671   : > { %2387 = vmatpush3.bf16.msra.mxu1 %v2584_v16 }
 0x672   : > { %2388 = vmatprep.subr.bf16.mxu1 %v3082_v0 }
 0x675   : > { %2389 = vmatpush3.bf16.msra.mxu1 %v2585_v17 }
 0x676   : > { %2390 = vmatprep.subr.bf16.mxu1 %v3082_v0 }
 0x679   : > { %2391 = vmatpush3.bf16.msra.mxu1 %v2586_v18 }
 0x73f   : > { %v1786_v50 = vpop.f32.mrb[16].mxu1 }
 0x740   : > { %v1787_v51 = vadd.f32 %v2260_v49, %v1786_v50  ;;  %v2374_v52 = vpop.f32.mrb[17].mxu1 }
 0x741   : > { %v1789_v53 = vpop.f32.mrb[18].mxu1 }
 0x742   : > { %v2375_v54 = vpop.f32.mrb[19].mxu1  ;;  %v1792_v55 = vadd.f32 %v1787_v51, %v3578_v3 }
 0x744   : > { %v1793_v56 = vsel %vm640_vm1, %v1792_v55, 0.0 }
 0x745   : > { %1794 = vadd.xlane.f32.xlu0 %v1793_v56 }
 0x7d2   : > { %v1795_v57 = vpop.xlane.xlu0 %1794 }
 0x7d3   : > { %v1797_v58 = vmul.f32 0.03125, %v1795_v57 }
 0x7d5   : > { %v1798_v59 = vsub.f32 %v1792_v55, %v1797_v58 }
 0x7d7   : > { %v1799_v60 = vmul.f32 %v1798_v59, %v1798_v59 }
 0x7d9   : > { %v1800_v61 = vsel %vm640_vm1, %v1799_v60, 0.0 }
 0x7da   : > { %1801 = vadd.xlane.f32.xlu1 %v1800_v61 }
 0x867   : > { %v1802_v4 = vpop.xlane.xlu1 %1801 }
 0x868   : > { %v1803_v5 = vmul.f32 0.03125, %v1802_v4 }
 0x86a   : > { %v1804_v6 = vadd.f32 1e-12, %v1803_v5 }
 0x86c   : > { %2603 = vrsqrt.f32 %v1804_v6 }
 0x876   : > { %v2604_v3 = vpop.eup %2603 }
 0x877   : > { %v1806_v8 = vmul.f32 %v2604_v3, %v1798_v59 }
 0x879   : > { %v1814_v10 = vmul.f32 %v2264_v7, %v1806_v8 }
 0x87b   : > { %v1822_v11 = vadd.f32 %v2265_v9, %v1814_v10 }
 0x87d   : > { %v1823_v14 = vpack.c.bf16 %v1822_v11, %v1822_v11 }
 0x87f   : > { %2381 = vmatmul.mubr.msk.bf16.vlgmr.msra.gmra.mrb[20].mxu0 %vm640_vm1, %v1823_v14 }
 0x952   : > { %v1884_v20 = vpop.f32.mrb[20].mxu0 }
 0x953   : > { %v1885_v21 = vadd.f32 %v2266_v19, %v1884_v20  ;;  %v2382_v13 = vpop.f32.mrb[21].mxu0 }
 0x954   : > { %v1887_v22 = vpop.f32.mrb[22].mxu0 }
 0x955   : > { %v1891_v24 = vmul.f32 0.70710677, %v1885_v21  ;;  %v2383_v12 = vpop.f32.mrb[23].mxu0  ;;  %v1890_v26 = vmul.f32 0.5, %v1885_v21 }
 0x957   : > { %2605 = verf.f32 %v1891_v24 }
 0x961   : > { %v2606_v25 = vpop.eup %2605 }
 0x962   : > { %v1893_v27 = vadd.f32 1.0, %v2606_v25 }
 0x964   : > { %v1894_v28 = vmul.f32 %v1893_v27, %v1890_v26 }
 0x966   : > { %v1895_v1 = vpack.c.bf16 %v1894_v28, %v1894_v28 }
 0x968   : > { %2393 = vmatmul.mubr.msk.bf16.vlgmr.msra.gmra.mrb[20].mxu1 %vm1935_vm6, %v1895_v1 }
 0xa3b   : > { %v1973_v29 = vpop.f32.mrb[20].mxu1 }
 0xa3c   : > { %v1974_v0 = vadd.f32 %v2270_v2, %v1973_v29  ;;  %v2394_v30 = vpop.f32.mrb[21].mxu1 }
 0xa3d   : > { %v1976_v31 = vpop.f32.mrb[22].mxu1 }
 0xa3e   : > { %v2395_v32 = vpop.f32.mrb[23].mxu1  ;;  %v1979_v34 = vadd.f32 %v1974_v0, %v1822_v11 }
 0xa40   : > { %v1980_v35 = vsel %vm640_vm1, %v1979_v34, 0.0 }
 0xa41   : > { %1981 = vadd.xlane.f32.xlu0 %v1980_v35 }
 0xace   : > { %v1982_v36 = vpop.xlane.xlu0 %1981 }
 0xacf   : > { %v1983_v37 = vmul.f32 0.03125, %v1982_v36 }
 0xad1   : > { %v1984_v38 = vsub.f32 %v1979_v34, %v1983_v37 }
 0xad3   : > { %v1985_v39 = vmul.f32 %v1984_v38, %v1984_v38 }
 0xad5   : > { %v1986_v40 = vsel %vm640_vm1, %v1985_v39, 0.0 }
 0xad6   : > { %1987 = vadd.xlane.f32.xlu0 %v1986_v40 }
 0xb63   : > { %v1988_v41 = vpop.xlane.xlu0 %1987 }
 0xb64   : > { %v1989_v42 = vmul.f32 0.03125, %v1988_v41 }
 0xb66   : > { %v1990_v43 = vadd.f32 1e-12, %v1989_v42 }
 0xb68   : > { %2607 = vrsqrt.f32 %v1990_v43 }
 0xb72   : > { %v2608_v23 = vpop.eup %2607 }
 0xb73   : > { %v1992_v45 = vmul.f32 %v2608_v23, %v1984_v38 }
 0xb75   : > { %v2000_v47 = vmul.f32 %v2276_v44, %v1992_v45 }
 0xb77   : > { %v2008_v48 = vadd.f32 %v2277_v46, %v2000_v47 }
 0xb79   : > { %2009 = vst.msk [vmem:[%s613_s22] sm:$0xff] %vm640_vm1, %v2008_v48 }
 0xb7a   : > { %2988 = shalt.err (!%p2985_p7)
}
 0xb7b   : > { %s2989_s17 = scalar_lea.hbm %s3749_s0, 128  ;;  %s2993_s1 = scalar_lea.hbm %s3856_s19, 256 }
 0xb7c   : > { %p2990_p6 = scmp.ne.s32.totalorder %s3749_s0, %s2989_s17  ;;  %p2994_p1 = scmp.lt.u32.totalorder %s3749_s0, %s3856_s19 }
 0xb7d   : > { %p2995_p13 = scmp.lt.u32.totalorder %s2993_s1, %s2989_s17  ;;  %p2997_p2 = scmp.lt.u32.totalorder %s2989_s17, %s3749_s0 }
 0xb7e   : > { %p2991_p9 = pnand %p2990_p6, %p3857_p3 }
 0xb7f   : > { %p2996_p0 = por %p2995_p13, %p2994_p1 }
 0xb80   : > { %p2992_p12 = pneg %p2991_p9 }
 0xb81   : > { %p2998_p4 = por %p2997_p2, %p2996_p0 }
 0xb83   : > { %p2999_p10 = pnand %p2998_p4, %p2992_p12 }
 0xb85   : > { %3002 = shalt.err (!%p2999_p10)
}
 0xb86   : > { %2446 = dma.vmem_to_hbm [thread:$0]  (%p3857_p3), %s3751_s20, 128, %s3749_s0, %s2011_s21  }
 0xb87 PF: > { %s3858_s24 = sld [smem:[#allocation32_spill]]  ;;  %p3859_p11 = scmp.ne.s32.totalorder %s3838_s29, 0 }
 0xb88   : > { %p3860_p8 = scmp.ge.s32.totalorder %s3065_s28, 2 }
 0xb8a   : > { %p2490_p5 = pnand %p3860_p8, %p3859_p11 }
 0xb8d   : > { %s2036_s16 = sand.u32 1, %s3858_s24  }
 0xb8e   : > { %s2037_s2 = scalar_lea.sflag [#allocation4], %s2036_s16 }
 0xb8f   : > { %3048 = dma.done.wait (!%p2490_p5), %s2037_s2, 128  }
 0xb90   : > { %3050 = vsyncadd (!%p2490_p5), %s2037_s2, 4294967168  ;;  %p32_p7 = scmp.ge.s32.totalorder %s3462_s18, 4   ;;  %s3861_s25 = smov %s3057_s26 }
 0xb91   : > { %s3862_s26 = smov %s3061_s27  ;;  %s3863_s27 = smov %s3473_s23 }
 0xb92   : > { %s3864_s28 = smov %s3462_s18  ;;  %34 = sbr.rel (!%p32_p7) target bundleno = 16 (0x10), region = 165 }
 0xb99   :  { %2042 = vsyncpa [#allocation3], 1 }
 0xb9a   :  { %2044 = vsyncpa [#allocation3 + $0x1], 1 }
 0xb9b   :  { %2045 = vsyncpa [#allocation6], 1 }
 0xb9c   :  { %2046 = vsyncpa [#allocation9], 1 }
 0xb9d   :  { %2047 = vsyncpa [#allocation12], 1 }
 0xb9e   :  { %2048 = vsyncpa [#allocation15], 1 }
 0xb9f   :  { %2049 = vsyncpa [#allocation18], 1 }
 0xba0   :  { %2050 = vsyncpa [#allocation21], 1 }
 0xba1   :  { %2051 = vsyncpa [#allocation4], 1 }
 0xba2   :  { %2053 = vsyncpa [#allocation4 + $0x1], 1 }

</bundles_post_ra>
